<compile_context>
chip_gen: v7x
topology: tpu7x:2x2x1
jax: 0.10.0
libtpu: 0.0.40
codegen_flags: <defaults>
</compile_context>

<pallas_src>
import functools

import jax
import jax.numpy as jnp
from jax.experimental import pallas as pl
from jax.experimental.pallas import tpu as pltpu


def _attention_kernel(x_ref, wqkv_ref, bqkv_ref, wo_ref, bo_ref, out_ref,
                      qkv_ref, oheads_ref, *,
                      block_batch, seq_len, num_heads, attn_dim):
    """One grid step: `block_batch` samples of full multi-head attention.

    x_ref      : (block_batch*seq_len, input_dim)   bf16
    wqkv_ref   : (input_dim, 3*num_heads*attn_dim)  bf16  fused [Wq*scale | Wk | Wv]
    bqkv_ref   : (1, 3*num_heads*attn_dim)          f32   fused [bq*scale | bk | bv]
    wo_ref     : (num_heads*attn_dim, input_dim)    bf16
    bo_ref     : (1, input_dim)                     f32
    out_ref    : (block_batch*seq_len, input_dim)   f32
    qkv_ref    : (rows, 3*H*D) bf16 VMEM scratch    (bounds the QKV live range)
    oheads_ref : (rows, H*D)   bf16 VMEM scratch    (per-head outputs, lane-packed)
    """
    hd = num_heads * attn_dim
    rows = block_batch * seq_len
    cdt = wqkv_ref.dtype  # MXU compute dtype (bf16); accumulate in f32.

    # --- Fused Q/K/V projection: one MXU pass over the whole (rows, E) slab.
    # Softmax scale is pre-folded into Wq/bq, so no per-step score multiply.
    qkv_ref[...] = (jnp.dot(x_ref[...], wqkv_ref[...],
                            preferred_element_type=jnp.float32)
                    + bqkv_ref[...]).astype(cdt)

    # --- Per-head attention.  Each head's output is stored at its lane offset
    # in the (rows, H*D) scratch slab; the output projection then runs once
    # with contraction depth K = H*D (no K=attn_dim matmuls, no f32 running
    # accumulator live across the unrolled loop).
    for h in range(num_heads):
        lo = h * attn_dim
        q = qkv_ref[:, lo:lo + attn_dim].reshape(block_batch, seq_len, attn_dim)
        k = qkv_ref[:, hd + lo:hd + lo + attn_dim].reshape(
            block_batch, seq_len, attn_dim)
        v = qkv_ref[:, 2 * hd + lo:2 * hd + lo + attn_dim].reshape(
            block_batch, seq_len, attn_dim)

        # Scores contract the last dims directly (no kh.T / XLU transpose).
        s = jnp.einsum("bqd,bkd->bqk", q, k,
                       preferred_element_type=jnp.float32)      # (Bt, S, S) f32
        m = jnp.max(s, axis=-1, keepdims=True)
        p = jnp.exp(s - m)
        denom = jnp.sum(p, axis=-1, keepdims=True)
        p = p * pl.reciprocal(denom, approx=True)                # EUP divide
        # TODO(synk): attention dropout skipped (eval-mode identity).

        o = jnp.einsum("bqk,bkd->bqd", p.astype(cdt), v,
                       preferred_element_type=jnp.float32)      # (Bt, S, D)
        oheads_ref[:, lo:lo + attn_dim] = o.reshape(rows, attn_dim).astype(cdt)

    # --- Single HD-deep output projection + bias.
    out_ref[...] = (jnp.dot(oheads_ref[...], wo_ref[...],
                            preferred_element_type=jnp.float32)
                    + bo_ref[...]).astype(out_ref.dtype)


def _vmem_capacity_bytes(default=64 << 20):
    """Per-core VMEM capacity; conservative 64 MiB fallback (valid on all gens)."""
    try:
        info = pltpu.get_tpu_info()
        cap = getattr(info, "vmem_capacity_bytes", None)
        return int(cap) if cap else default
    except Exception:
        return default


def _is_multi_tensorcore_chip():
    """Heuristic: prefer an even grid only on 2-TC chips (v7x-like)."""
    try:
        kind = jax.devices()[0].device_kind.lower()
        return "v7" in kind
    except Exception:
        return False


def _pick_block_batch(batch, seq_len, *, max_rows, vmem_ok, prefer_even_grid):
    """Largest sample-block that fits the row budget and the VMEM estimate.

    Only on multi-TensorCore chips do we additionally prefer an even number of
    grid steps (keeps both TCs busy under dimension_semantics=("parallel",)).
    The fallback never returns the full batch when nothing fits the budget;
    it takes the smallest sublane-aligned divisor instead.
    """
    aligned = [bt for bt in range(batch, 0, -1)
               if batch % bt == 0 and ((bt * seq_len) % 8 == 0 or bt == batch)]
    if not aligned:
        aligned = [batch]  # full-array block shape is always legal
    fitting = [bt for bt in aligned if bt * seq_len <= max_rows and vmem_ok(bt)]
    pool = fitting if fitting else [aligned[-1]]
    if prefer_even_grid:
        for bt in pool:
            if (batch // bt) % 2 == 0:
                return bt
    return pool[0]


def intersample_attention(x, params, *, num_heads, attn_dim,
                          max_block_rows=1024, compute_dtype=jnp.bfloat16):
    """x: (B, S, E) or (B, E) float32. params: dict of weights/biases.

    Returns (B, S, E) float32 (or (B, 1, E) for 2-D input), matching the
    PyTorch module's eval-mode forward.
    """
    if x.ndim == 2:
        x = x[:, None, :]
    B, S, E = x.shape
    H, D = num_heads, attn_dim
    HD = H * D
    scale = 1.0 / (attn_dim ** 0.5)
    csize = jnp.dtype(compute_dtype).itemsize

    # ---- One-time parameter packing (wrapper-side) ----
    # Softmax scale folded into the Q projection; weights pre-cast to bf16.
    w_qkv = jnp.concatenate(
        [params["wq"] * scale, params["wk"], params["wv"]],
        axis=1).astype(compute_dtype)                            # (E, 3*HD)
    b_qkv = jnp.concatenate(
        [params["bq"] * scale, params["bk"], params["bv"]])[None, :].astype(jnp.float32)
    w_o = params["wo"].astype(compute_dtype)                     # (HD, E)
    b_o = params["bo"][None, :].astype(jnp.float32)

    # ---- Hardware-aware block sizing ----
    vmem_cap = _vmem_capacity_bytes()
    prefer_even = _is_multi_tensorcore_chip()

    def est_bytes(bt):
        rows = bt * S
        x_blk = rows * E * csize                  # streamed bf16 input block
        out_blk = rows * E * 4                    # f32 output block
        weights = (E * 3 * HD + HD * E) * csize + (3 * HD + E) * 4
        scratch = rows * 3 * HD * csize + rows * HD * csize
        interim = bt * S * S * 4 * 2 + rows * D * 4   # scores/probs + head output (f32)
        return 2 * (x_blk + out_blk) + weights + scratch + interim

    budget = int(0.6 * vmem_cap)
    Bt = _pick_block_batch(B, S, max_rows=max_block_rows,
                           vmem_ok=lambda bt: est_bytes(bt) <= budget,
                           prefer_even_grid=prefer_even)
    rows = Bt * S
    grid = (B // Bt,)
    vmem_limit = int(min(vmem_cap, max(2 * est_bytes(Bt), 32 << 20)))

    # Stream x as a flat bf16 (B*S, E) slab: halves HBM bytes of the dominant
    # streamed operand and halves its double-buffered VMEM footprint.
    x2 = x.reshape(B * S, E).astype(compute_dtype)

    kernel = functools.partial(
        _attention_kernel,
        block_batch=Bt, seq_len=S, num_heads=H, attn_dim=D)

    flops = (2 * B * S * E * 3 * HD      # fused QKV projection
             + 4 * B * H * S * S * D     # scores + attn @ V
             + 2 * B * S * HD * E)       # output projection
    bytes_acc = (x2.size * csize + B * S * E * 4
                 + w_qkv.size * csize + w_o.size * csize
                 + b_qkv.size * 4 + b_o.size * 4)
    cost = pl.CostEstimate(flops=flops, transcendentals=B * H * S * S,
                           bytes_accessed=bytes_acc)

    def run(single_buffer_weights):
        pmode = pl.Buffered(1) if single_buffer_weights else None

        def const(shape):
            imap = lambda b, _s=shape: (0,) * len(_s)
            if pmode is None:
                return pl.BlockSpec(shape, imap)
            return pl.BlockSpec(shape, imap, pipeline_mode=pmode)

        return pl.pallas_call(
            kernel,
            out_shape=jax.ShapeDtypeStruct((B * S, E), jnp.float32),
            grid=grid,
            in_specs=[
                pl.BlockSpec((rows, E), lambda b: (b, 0)),   # x slab
                const((E, 3 * HD)),                          # fused Wqkv (scale folded)
                const((1, 3 * HD)),                          # fused bias
                const((HD, E)),                              # Wo
                const((1, E)),                               # bo
            ],
            out_specs=pl.BlockSpec((rows, E), lambda b: (b, 0)),
            scratch_shapes=[
                pltpu.VMEM((rows, 3 * HD), compute_dtype),   # QKV slab
                pltpu.VMEM((rows, HD), compute_dtype),       # lane-packed head outputs
            ],
            compiler_params=pltpu.CompilerParams(
                dimension_semantics=("parallel",),
                vmem_limit_bytes=vmem_limit),
            cost_estimate=cost,
        )(x2, w_qkv, b_qkv, w_o, b_o)

    try:
        out = run(True)
    except Exception:
        # pl.Buffered(1) on constant blocks not supported by this version:
        # fall back to default double-buffered weight blocks.
        out = run(False)

    return out.reshape(B, S, E)


def _init_params(key, input_dim, attn_dim, num_heads):
    """Deterministic synthetic parameters, PyTorch-Linear-shaped (stored transposed)."""
    hd = attn_dim * num_heads
    keys = jax.random.split(key, 8)
    scale_in = 1.0 / jnp.sqrt(input_dim)
    scale_hd = 1.0 / jnp.sqrt(hd)
    return {
        "wq": jax.random.uniform(keys[0], (input_dim, hd), jnp.float32, -scale_in, scale_in),
        "bq": jax.random.uniform(keys[1], (hd,), jnp.float32, -scale_in, scale_in),
        "wk": jax.random.uniform(keys[2], (input_dim, hd), jnp.float32, -scale_in, scale_in),
        "bk": jax.random.uniform(keys[3], (hd,), jnp.float32, -scale_in, scale_in),
        "wv": jax.random.uniform(keys[4], (input_dim, hd), jnp.float32, -scale_in, scale_in),
        "bv": jax.random.uniform(keys[5], (hd,), jnp.float32, -scale_in, scale_in),
        "wo": jax.random.uniform(keys[6], (hd, input_dim), jnp.float32, -scale_hd, scale_hd),
        "bo": jax.random.uniform(keys[7], (input_dim,), jnp.float32, -scale_hd, scale_hd),
    }


def _reference(x, p, num_heads, attn_dim):
    """Plain-JAX f32 reference mirroring the PyTorch forward (eval mode)."""
    B, S, E = x.shape
    q = (x @ p["wq"] + p["bq"]).reshape(B, S, num_heads, attn_dim).transpose(0, 2, 1, 3)
    k = (x @ p["wk"] + p["bk"]).reshape(B, S, num_heads, attn_dim).transpose(0, 2, 1, 3)
    v = (x @ p["wv"] + p["bv"]).reshape(B, S, num_heads, attn_dim).transpose(0, 2, 1, 3)
    scores = jnp.einsum("bhqd,bhkd->bhqk", q, k) / (attn_dim ** 0.5)
    w = jax.nn.softmax(scores, axis=-1)
    o = jnp.einsum("bhqk,bhkd->bhqd", w, v).transpose(0, 2, 1, 3).reshape(B, S, -1)
    return o @ p["wo"] + p["bo"]


if __name__ == "__main__":
    batch, seq_len, input_dim = 2, 8, 32
    attn_dim, num_heads = 16, 4

    key = jax.random.PRNGKey(0)
    key_x, key_p = jax.random.split(key)
    x = jax.random.normal(key_x, (batch, seq_len, input_dim), jnp.float32)
    params = _init_params(key_p, input_dim, attn_dim, num_heads)

    out = intersample_attention(x, params, num_heads=num_heads, attn_dim=attn_dim)
    out = jax.block_until_ready(out)

    ref = _reference(x, params, num_heads, attn_dim)
    assert out.shape == (batch, seq_len, input_dim)
    # bf16 MXU operands + approx softmax reciprocal vs the f32 reference.
    max_err = float(jnp.max(jnp.abs(out - ref)))
    assert jnp.allclose(out, ref, atol=5e-2, rtol=5e-2), (
        f"mismatch vs reference (max abs err {max_err})")

    print("KERNEL_OK")
</pallas_src>

<mosaic_0001>
module attributes {stable_mosaic.version = 11 : i64} {
  func.func @_attention_kernel(%arg0: i32, %arg1: memref<16x32xbf16, #tpu.memory_space<vmem>>, %arg2: memref<32x192xbf16, #tpu.memory_space<vmem>>, %arg3: memref<1x192xf32, #tpu.memory_space<vmem>>, %arg4: memref<64x32xbf16, #tpu.memory_space<vmem>>, %arg5: memref<1x32xf32, #tpu.memory_space<vmem>>, %arg6: memref<16x32xf32, #tpu.memory_space<vmem>>, %arg7: memref<16x192xbf16, #tpu.memory_space<vmem>>, %arg8: memref<16x64xbf16, #tpu.memory_space<vmem>>) attributes {dimension_semantics = [#tpu.dimension_semantics<parallel>], iteration_bounds = array<i64: 1>, scalar_prefetch = 0 : i64, scratch_operands = 2 : i64, tpu.core_type = #tpu.core_type<tc>, window_params = [{transform_indices = @transform_0, window_bounds = array<i64: 16, 32>}, {pipeline_mode = #tpu.pipeline_mode<synchronous>, transform_indices = @transform_1, window_bounds = array<i64: 32, 192>}, {pipeline_mode = #tpu.pipeline_mode<synchronous>, transform_indices = @transform_2, window_bounds = array<i64: 1, 192>}, {pipeline_mode = #tpu.pipeline_mode<synchronous>, transform_indices = @transform_3, window_bounds = array<i64: 64, 32>}, {pipeline_mode = #tpu.pipeline_mode<synchronous>, transform_indices = @transform_4, window_bounds = array<i64: 1, 32>}, {transform_indices = @transform_5, window_bounds = array<i64: 16, 32>}]} {
    %c0 = arith.constant 0 : index
    %c0_0 = arith.constant 0 : index
    %0 = vector.load %arg1[%c0, %c0_0] : memref<16x32xbf16, #tpu.memory_space<vmem>>, vector<16x32xbf16>
    %c0_1 = arith.constant 0 : index
    %c0_2 = arith.constant 0 : index
    %1 = vector.load %arg2[%c0_1, %c0_2] : memref<32x192xbf16, #tpu.memory_space<vmem>>, vector<32x192xbf16>
    %cst = arith.constant dense<0.000000e+00> : vector<16x192xf32>
    %2 = tpu.matmul %0, %1, %cst {dimension_numbers = #tpu.dot_dimension_numbers<[1], [0], [0], [1], [0, 0, 1, 1], [], []>} : vector<16x32xbf16>, vector<32x192xbf16>, vector<16x192xf32> -> vector<16x192xf32>
    %c0_3 = arith.constant 0 : index
    %c0_4 = arith.constant 0 : index
    %3 = vector.load %arg3[%c0_3, %c0_4] : memref<1x192xf32, #tpu.memory_space<vmem>>, vector<1x192xf32>
    %4 = vector.broadcast %3 : vector<1x192xf32> to vector<16x192xf32>
    %5 = arith.addf %2, %4 : vector<16x192xf32>
    %6 = arith.truncf %5 : vector<16x192xf32> to vector<16x192xbf16>
    %c0_5 = arith.constant 0 : index
    %c0_6 = arith.constant 0 : index
    %7 = vector.load %arg7[%c0_5, %c0_6] : memref<16x192xbf16, #tpu.memory_space<vmem>>, vector<16x192xbf16>
    tpu.vector_store %arg7[%c0_5, %c0_6], %6 {strides = array<i32>} : memref<16x192xbf16, #tpu.memory_space<vmem>>, vector<16x192xbf16>,
    %c0_7 = arith.constant 0 : index
    %c0_8 = arith.constant 0 : index
    %8 = vector.load %arg7[%c0_7, %c0_8] : memref<16x192xbf16, #tpu.memory_space<vmem>>, vector<16x16xbf16>
    %9 = vector.shape_cast %8 : vector<16x16xbf16> to vector<2x8x16xbf16>
    %c0_9 = arith.constant 0 : index
    %c64 = arith.constant 64 : index
    %10 = vector.load %arg7[%c0_9, %c64] : memref<16x192xbf16, #tpu.memory_space<vmem>>, vector<16x16xbf16>
    %11 = vector.shape_cast %10 : vector<16x16xbf16> to vector<2x8x16xbf16>
    %c0_10 = arith.constant 0 : index
    %c128 = arith.constant 128 : index
    %12 = vector.load %arg7[%c0_10, %c128] : memref<16x192xbf16, #tpu.memory_space<vmem>>, vector<16x16xbf16>
    %13 = vector.shape_cast %12 : vector<16x16xbf16> to vector<2x8x16xbf16>
    "tpu.trace_start"() <{level = 10 : i32, message = "bqd,bkd->bqk"}> : () -> ()
    %cst_11 = arith.constant dense<0.000000e+00> : vector<2x8x8xf32>
    %14 = tpu.matmul %9, %11, %cst_11 {dimension_numbers = #tpu.dot_dimension_numbers<[2], [2], [1], [1], [0, 0, 0, 1, 1, 1], [0], [0]>} : vector<2x8x16xbf16>, vector<2x8x16xbf16>, vector<2x8x8xf32> -> vector<2x8x8xf32>
    "tpu.trace_stop"() : () -> ()
    %cst_12 = arith.constant dense<0xFF800000> : vector<2x8xf32>
    %15 = vector.multi_reduction <maximumf>, %14, %cst_12 [2] : vector<2x8x8xf32> to vector<2x8xf32>
    %16 = vector.shape_cast %15 : vector<2x8xf32> to vector<2x8x1xf32>
    %17 = vector.broadcast %16 : vector<2x8x1xf32> to vector<2x8x8xf32>
    %18 = arith.subf %14, %17 : vector<2x8x8xf32>
    %19 = math.exp %18 : vector<2x8x8xf32>
    %cst_13 = arith.constant dense<0.000000e+00> : vector<2x8xf32>
    %20 = vector.multi_reduction <add>, %19, %cst_13 [2] : vector<2x8x8xf32> to vector<2x8xf32>
    %21 = vector.shape_cast %20 : vector<2x8xf32> to vector<2x8x1xf32>
    %22 = tpu.reciprocal %21 {approx = true} : vector<2x8x1xf32> -> vector<2x8x1xf32>
    %23 = vector.broadcast %22 : vector<2x8x1xf32> to vector<2x8x8xf32>
    %24 = arith.mulf %19, %23 : vector<2x8x8xf32>
    %25 = arith.truncf %24 : vector<2x8x8xf32> to vector<2x8x8xbf16>
    "tpu.trace_start"() <{level = 10 : i32, message = "bqk,bkd->bqd"}> : () -> ()
    %cst_14 = arith.constant dense<0.000000e+00> : vector<2x8x16xf32>
    %26 = tpu.matmul %25, %13, %cst_14 {dimension_numbers = #tpu.dot_dimension_numbers<[2], [1], [1], [2], [0, 0, 0, 1, 1, 2], [0], [0]>} : vector<2x8x8xbf16>, vector<2x8x16xbf16>, vector<2x8x16xf32> -> vector<2x8x16xf32>
    "tpu.trace_stop"() : () -> ()
    %27 = vector.shape_cast %26 : vector<2x8x16xf32> to vector<16x16xf32>
    %28 = arith.truncf %27 : vector<16x16xf32> to vector<16x16xbf16>
    %c0_15 = arith.constant 0 : index
    %c0_16 = arith.constant 0 : index
    %29 = vector.load %arg8[%c0_15, %c0_16] : memref<16x64xbf16, #tpu.memory_space<vmem>>, vector<16x16xbf16>
    tpu.vector_store %arg8[%c0_15, %c0_16], %28 {strides = array<i32>} : memref<16x64xbf16, #tpu.memory_space<vmem>>, vector<16x16xbf16>,
    %c0_17 = arith.constant 0 : index
    %c16 = arith.constant 16 : index
    %30 = vector.load %arg7[%c0_17, %c16] : memref<16x192xbf16, #tpu.memory_space<vmem>>, vector<16x16xbf16>
    %31 = vector.shape_cast %30 : vector<16x16xbf16> to vector<2x8x16xbf16>
    %c0_18 = arith.constant 0 : index
    %c80 = arith.constant 80 : index
    %32 = vector.load %arg7[%c0_18, %c80] : memref<16x192xbf16, #tpu.memory_space<vmem>>, vector<16x16xbf16>
    %33 = vector.shape_cast %32 : vector<16x16xbf16> to vector<2x8x16xbf16>
    %c0_19 = arith.constant 0 : index
    %c144 = arith.constant 144 : index
    %34 = vector.load %arg7[%c0_19, %c144] : memref<16x192xbf16, #tpu.memory_space<vmem>>, vector<16x16xbf16>
    %35 = vector.shape_cast %34 : vector<16x16xbf16> to vector<2x8x16xbf16>
    "tpu.trace_start"() <{level = 10 : i32, message = "bqd,bkd->bqk"}> : () -> ()
    %cst_20 = arith.constant dense<0.000000e+00> : vector<2x8x8xf32>
    %36 = tpu.matmul %31, %33, %cst_20 {dimension_numbers = #tpu.dot_dimension_numbers<[2], [2], [1], [1], [0, 0, 0, 1, 1, 1], [0], [0]>} : vector<2x8x16xbf16>, vector<2x8x16xbf16>, vector<2x8x8xf32> -> vector<2x8x8xf32>
    "tpu.trace_stop"() : () -> ()
    %cst_21 = arith.constant dense<0xFF800000> : vector<2x8xf32>
    %37 = vector.multi_reduction <maximumf>, %36, %cst_21 [2] : vector<2x8x8xf32> to vector<2x8xf32>
    %38 = vector.shape_cast %37 : vector<2x8xf32> to vector<2x8x1xf32>
    %39 = vector.broadcast %38 : vector<2x8x1xf32> to vector<2x8x8xf32>
    %40 = arith.subf %36, %39 : vector<2x8x8xf32>
    %41 = math.exp %40 : vector<2x8x8xf32>
    %cst_22 = arith.constant dense<0.000000e+00> : vector<2x8xf32>
    %42 = vector.multi_reduction <add>, %41, %cst_22 [2] : vector<2x8x8xf32> to vector<2x8xf32>
    %43 = vector.shape_cast %42 : vector<2x8xf32> to vector<2x8x1xf32>
    %44 = tpu.reciprocal %43 {approx = true} : vector<2x8x1xf32> -> vector<2x8x1xf32>
    %45 = vector.broadcast %44 : vector<2x8x1xf32> to vector<2x8x8xf32>
    %46 = arith.mulf %41, %45 : vector<2x8x8xf32>
    %47 = arith.truncf %46 : vector<2x8x8xf32> to vector<2x8x8xbf16>
    "tpu.trace_start"() <{level = 10 : i32, message = "bqk,bkd->bqd"}> : () -> ()
    %cst_23 = arith.constant dense<0.000000e+00> : vector<2x8x16xf32>
    %48 = tpu.matmul %47, %35, %cst_23 {dimension_numbers = #tpu.dot_dimension_numbers<[2], [1], [1], [2], [0, 0, 0, 1, 1, 2], [0], [0]>} : vector<2x8x8xbf16>, vector<2x8x16xbf16>, vector<2x8x16xf32> -> vector<2x8x16xf32>
    "tpu.trace_stop"() : () -> ()
    %49 = vector.shape_cast %48 : vector<2x8x16xf32> to vector<16x16xf32>
    %50 = arith.truncf %49 : vector<16x16xf32> to vector<16x16xbf16>
    %c0_24 = arith.constant 0 : index
    %c16_25 = arith.constant 16 : index
    %51 = vector.load %arg8[%c0_24, %c16_25] : memref<16x64xbf16, #tpu.memory_space<vmem>>, vector<16x16xbf16>
    tpu.vector_store %arg8[%c0_24, %c16_25], %50 {strides = array<i32>} : memref<16x64xbf16, #tpu.memory_space<vmem>>, vector<16x16xbf16>,
    %c0_26 = arith.constant 0 : index
    %c32 = arith.constant 32 : index
    %52 = vector.load %arg7[%c0_26, %c32] : memref<16x192xbf16, #tpu.memory_space<vmem>>, vector<16x16xbf16>
    %53 = vector.shape_cast %52 : vector<16x16xbf16> to vector<2x8x16xbf16>
    %c0_27 = arith.constant 0 : index
    %c96 = arith.constant 96 : index
    %54 = vector.load %arg7[%c0_27, %c96] : memref<16x192xbf16, #tpu.memory_space<vmem>>, vector<16x16xbf16>
    %55 = vector.shape_cast %54 : vector<16x16xbf16> to vector<2x8x16xbf16>
    %c0_28 = arith.constant 0 : index
    %c160 = arith.constant 160 : index
    %56 = vector.load %arg7[%c0_28, %c160] : memref<16x192xbf16, #tpu.memory_space<vmem>>, vector<16x16xbf16>
    %57 = vector.shape_cast %56 : vector<16x16xbf16> to vector<2x8x16xbf16>
    "tpu.trace_start"() <{level = 10 : i32, message = "bqd,bkd->bqk"}> : () -> ()
    %cst_29 = arith.constant dense<0.000000e+00> : vector<2x8x8xf32>
    %58 = tpu.matmul %53, %55, %cst_29 {dimension_numbers = #tpu.dot_dimension_numbers<[2], [2], [1], [1], [0, 0, 0, 1, 1, 1], [0], [0]>} : vector<2x8x16xbf16>, vector<2x8x16xbf16>, vector<2x8x8xf32> -> vector<2x8x8xf32>
    "tpu.trace_stop"() : () -> ()
    %cst_30 = arith.constant dense<0xFF800000> : vector<2x8xf32>
    %59 = vector.multi_reduction <maximumf>, %58, %cst_30 [2] : vector<2x8x8xf32> to vector<2x8xf32>
    %60 = vector.shape_cast %59 : vector<2x8xf32> to vector<2x8x1xf32>
    %61 = vector.broadcast %60 : vector<2x8x1xf32> to vector<2x8x8xf32>
    %62 = arith.subf %58, %61 : vector<2x8x8xf32>
    %63 = math.exp %62 : vector<2x8x8xf32>
    %cst_31 = arith.constant dense<0.000000e+00> : vector<2x8xf32>
    %64 = vector.multi_reduction <add>, %63, %cst_31 [2] : vector<2x8x8xf32> to vector<2x8xf32>
    %65 = vector.shape_cast %64 : vector<2x8xf32> to vector<2x8x1xf32>
    %66 = tpu.reciprocal %65 {approx = true} : vector<2x8x1xf32> -> vector<2x8x1xf32>
    %67 = vector.broadcast %66 : vector<2x8x1xf32> to vector<2x8x8xf32>
    %68 = arith.mulf %63, %67 : vector<2x8x8xf32>
    %69 = arith.truncf %68 : vector<2x8x8xf32> to vector<2x8x8xbf16>
    "tpu.trace_start"() <{level = 10 : i32, message = "bqk,bkd->bqd"}> : () -> ()
    %cst_32 = arith.constant dense<0.000000e+00> : vector<2x8x16xf32>
    %70 = tpu.matmul %69, %57, %cst_32 {dimension_numbers = #tpu.dot_dimension_numbers<[2], [1], [1], [2], [0, 0, 0, 1, 1, 2], [0], [0]>} : vector<2x8x8xbf16>, vector<2x8x16xbf16>, vector<2x8x16xf32> -> vector<2x8x16xf32>
    "tpu.trace_stop"() : () -> ()
    %71 = vector.shape_cast %70 : vector<2x8x16xf32> to vector<16x16xf32>
    %72 = arith.truncf %71 : vector<16x16xf32> to vector<16x16xbf16>
    %c0_33 = arith.constant 0 : index
    %c32_34 = arith.constant 32 : index
    %73 = vector.load %arg8[%c0_33, %c32_34] : memref<16x64xbf16, #tpu.memory_space<vmem>>, vector<16x16xbf16>
    tpu.vector_store %arg8[%c0_33, %c32_34], %72 {strides = array<i32>} : memref<16x64xbf16, #tpu.memory_space<vmem>>, vector<16x16xbf16>,
    %c0_35 = arith.constant 0 : index
    %c48 = arith.constant 48 : index
    %74 = vector.load %arg7[%c0_35, %c48] : memref<16x192xbf16, #tpu.memory_space<vmem>>, vector<16x16xbf16>
    %75 = vector.shape_cast %74 : vector<16x16xbf16> to vector<2x8x16xbf16>
    %c0_36 = arith.constant 0 : index
    %c112 = arith.constant 112 : index
    %76 = vector.load %arg7[%c0_36, %c112] : memref<16x192xbf16, #tpu.memory_space<vmem>>, vector<16x16xbf16>
    %77 = vector.shape_cast %76 : vector<16x16xbf16> to vector<2x8x16xbf16>
    %c0_37 = arith.constant 0 : index
    %c176 = arith.constant 176 : index
    %78 = vector.load %arg7[%c0_37, %c176] : memref<16x192xbf16, #tpu.memory_space<vmem>>, vector<16x16xbf16>
    %79 = vector.shape_cast %78 : vector<16x16xbf16> to vector<2x8x16xbf16>
    "tpu.trace_start"() <{level = 10 : i32, message = "bqd,bkd->bqk"}> : () -> ()
    %cst_38 = arith.constant dense<0.000000e+00> : vector<2x8x8xf32>
    %80 = tpu.matmul %75, %77, %cst_38 {dimension_numbers = #tpu.dot_dimension_numbers<[2], [2], [1], [1], [0, 0, 0, 1, 1, 1], [0], [0]>} : vector<2x8x16xbf16>, vector<2x8x16xbf16>, vector<2x8x8xf32> -> vector<2x8x8xf32>
    "tpu.trace_stop"() : () -> ()
    %cst_39 = arith.constant dense<0xFF800000> : vector<2x8xf32>
    %81 = vector.multi_reduction <maximumf>, %80, %cst_39 [2] : vector<2x8x8xf32> to vector<2x8xf32>
    %82 = vector.shape_cast %81 : vector<2x8xf32> to vector<2x8x1xf32>
    %83 = vector.broadcast %82 : vector<2x8x1xf32> to vector<2x8x8xf32>
    %84 = arith.subf %80, %83 : vector<2x8x8xf32>
    %85 = math.exp %84 : vector<2x8x8xf32>
    %cst_40 = arith.constant dense<0.000000e+00> : vector<2x8xf32>
    %86 = vector.multi_reduction <add>, %85, %cst_40 [2] : vector<2x8x8xf32> to vector<2x8xf32>
    %87 = vector.shape_cast %86 : vector<2x8xf32> to vector<2x8x1xf32>
    %88 = tpu.reciprocal %87 {approx = true} : vector<2x8x1xf32> -> vector<2x8x1xf32>
    %89 = vector.broadcast %88 : vector<2x8x1xf32> to vector<2x8x8xf32>
    %90 = arith.mulf %85, %89 : vector<2x8x8xf32>
    %91 = arith.truncf %90 : vector<2x8x8xf32> to vector<2x8x8xbf16>
    "tpu.trace_start"() <{level = 10 : i32, message = "bqk,bkd->bqd"}> : () -> ()
    %cst_41 = arith.constant dense<0.000000e+00> : vector<2x8x16xf32>
    %92 = tpu.matmul %91, %79, %cst_41 {dimension_numbers = #tpu.dot_dimension_numbers<[2], [1], [1], [2], [0, 0, 0, 1, 1, 2], [0], [0]>} : vector<2x8x8xbf16>, vector<2x8x16xbf16>, vector<2x8x16xf32> -> vector<2x8x16xf32>
    "tpu.trace_stop"() : () -> ()
    %93 = vector.shape_cast %92 : vector<2x8x16xf32> to vector<16x16xf32>
    %94 = arith.truncf %93 : vector<16x16xf32> to vector<16x16xbf16>
    %c0_42 = arith.constant 0 : index
    %c48_43 = arith.constant 48 : index
    %95 = vector.load %arg8[%c0_42, %c48_43] : memref<16x64xbf16, #tpu.memory_space<vmem>>, vector<16x16xbf16>
    tpu.vector_store %arg8[%c0_42, %c48_43], %94 {strides = array<i32>} : memref<16x64xbf16, #tpu.memory_space<vmem>>, vector<16x16xbf16>,
    %c0_44 = arith.constant 0 : index
    %c0_45 = arith.constant 0 : index
    %96 = vector.load %arg8[%c0_44, %c0_45] : memref<16x64xbf16, #tpu.memory_space<vmem>>, vector<16x64xbf16>
    %c0_46 = arith.constant 0 : index
    %c0_47 = arith.constant 0 : index
    %97 = vector.load %arg4[%c0_46, %c0_47] : memref<64x32xbf16, #tpu.memory_space<vmem>>, vector<64x32xbf16>
    %cst_48 = arith.constant dense<0.000000e+00> : vector<16x32xf32>
    %98 = tpu.matmul %96, %97, %cst_48 {dimension_numbers = #tpu.dot_dimension_numbers<[1], [0], [0], [1], [0, 0, 1, 1], [], []>} : vector<16x64xbf16>, vector<64x32xbf16>, vector<16x32xf32> -> vector<16x32xf32>
    %c0_49 = arith.constant 0 : index
    %c0_50 = arith.constant 0 : index
    %99 = vector.load %arg5[%c0_49, %c0_50] : memref<1x32xf32, #tpu.memory_space<vmem>>, vector<1x32xf32>
    %100 = vector.broadcast %99 : vector<1x32xf32> to vector<16x32xf32>
    %101 = arith.addf %98, %100 : vector<16x32xf32>
    %c0_51 = arith.constant 0 : index
    %c0_52 = arith.constant 0 : index
    %102 = vector.load %arg6[%c0_51, %c0_52] : memref<16x32xf32, #tpu.memory_space<vmem>>, vector<16x32xf32>
    tpu.vector_store %arg6[%c0_51, %c0_52], %101 {strides = array<i32>} : memref<16x32xf32, #tpu.memory_space<vmem>>, vector<16x32xf32>,
    return
  }
  func.func @transform_0(%arg0: i32) -> (i32, i32) {
    %c0_i32 = arith.constant 0 : i32
    %c0_i32_0 = arith.constant 0 : i32
    return %arg0, %c0_i32 : i32, i32
  }
  func.func @transform_1(%arg0: i32) -> (i32, i32) {
    %c0_i32 = arith.constant 0 : i32
    %c0_i32_0 = arith.constant 0 : i32
    %c0_i32_1 = arith.constant 0 : i32
    return %c0_i32, %c0_i32_0 : i32, i32
  }
  func.func @transform_2(%arg0: i32) -> (i32, i32) {
    %c0_i32 = arith.constant 0 : i32
    %c0_i32_0 = arith.constant 0 : i32
    %c0_i32_1 = arith.constant 0 : i32
    return %c0_i32, %c0_i32_0 : i32, i32
  }
  func.func @transform_3(%arg0: i32) -> (i32, i32) {
    %c0_i32 = arith.constant 0 : i32
    %c0_i32_0 = arith.constant 0 : i32
    %c0_i32_1 = arith.constant 0 : i32
    return %c0_i32, %c0_i32_0 : i32, i32
  }
  func.func @transform_4(%arg0: i32) -> (i32, i32) {
    %c0_i32 = arith.constant 0 : i32
    %c0_i32_0 = arith.constant 0 : i32
    %c0_i32_1 = arith.constant 0 : i32
    return %c0_i32, %c0_i32_0 : i32, i32
  }
  func.func @transform_5(%arg0: i32) -> (i32, i32) {
    %c0_i32 = arith.constant 0 : i32
    %c0_i32_0 = arith.constant 0 : i32
    return %arg0, %c0_i32 : i32, i32
  }
}

module attributes {stable_mosaic.version = 11 : i64} {
  func.func @_attention_kernel(%arg0: i32, %arg1: memref<16x32xbf16, #tpu.memory_space<vmem>>, %arg2: memref<32x192xbf16, #tpu.memory_space<vmem>>, %arg3: memref<1x192xf32, #tpu.memory_space<vmem>>, %arg4: memref<64x32xbf16, #tpu.memory_space<vmem>>, %arg5: memref<1x32xf32, #tpu.memory_space<vmem>>, %arg6: memref<16x32xf32, #tpu.memory_space<vmem>>, %arg7: memref<16x192xbf16, #tpu.memory_space<vmem>>, %arg8: memref<16x64xbf16, #tpu.memory_space<vmem>>) attributes {dimension_semantics = [#tpu.dimension_semantics<parallel>], iteration_bounds = array<i64: 1>, scalar_prefetch = 0 : i64, scratch_operands = 2 : i64, tpu.core_type = #tpu.core_type<tc>, window_params = [{transform_indices = @transform_0, window_bounds = array<i64: 16, 32>}, {pipeline_mode = #tpu.pipeline_mode<synchronous>, transform_indices = @transform_1, window_bounds = array<i64: 32, 192>}, {pipeline_mode = #tpu.pipeline_mode<synchronous>, transform_indices = @transform_2, window_bounds = array<i64: 1, 192>}, {pipeline_mode = #tpu.pipeline_mode<synchronous>, transform_indices = @transform_3, window_bounds = array<i64: 64, 32>}, {pipeline_mode = #tpu.pipeline_mode<synchronous>, transform_indices = @transform_4, window_bounds = array<i64: 1, 32>}, {transform_indices = @transform_5, window_bounds = array<i64: 16, 32>}]} {
    %c0 = arith.constant 0 : index
    %c0_0 = arith.constant 0 : index
    %0 = vector.load %arg1[%c0, %c0_0] : memref<16x32xbf16, #tpu.memory_space<vmem>>, vector<16x32xbf16>
    %c0_1 = arith.constant 0 : index
    %c0_2 = arith.constant 0 : index
    %1 = vector.load %arg2[%c0_1, %c0_2] : memref<32x192xbf16, #tpu.memory_space<vmem>>, vector<32x192xbf16>
    %cst = arith.constant dense<0.000000e+00> : vector<16x192xf32>
    %2 = tpu.matmul %0, %1, %cst {dimension_numbers = #tpu.dot_dimension_numbers<[1], [0], [0], [1], [0, 0, 1, 1], [], []>} : vector<16x32xbf16>, vector<32x192xbf16>, vector<16x192xf32> -> vector<16x192xf32>
    %c0_3 = arith.constant 0 : index
    %c0_4 = arith.constant 0 : index
    %3 = vector.load %arg3[%c0_3, %c0_4] : memref<1x192xf32, #tpu.memory_space<vmem>>, vector<1x192xf32>
    %4 = vector.broadcast %3 : vector<1x192xf32> to vector<16x192xf32>
    %5 = arith.addf %2, %4 : vector<16x192xf32>
    %6 = arith.truncf %5 : vector<16x192xf32> to vector<16x192xbf16>
    %c0_5 = arith.constant 0 : index
    %c0_6 = arith.constant 0 : index
    %7 = vector.load %arg7[%c0_5, %c0_6] : memref<16x192xbf16, #tpu.memory_space<vmem>>, vector<16x192xbf16>
    tpu.vector_store %arg7[%c0_5, %c0_6], %6 {strides = array<i32>} : memref<16x192xbf16, #tpu.memory_space<vmem>>, vector<16x192xbf16>,
    %c0_7 = arith.constant 0 : index
    %c0_8 = arith.constant 0 : index
    %8 = vector.load %arg7[%c0_7, %c0_8] : memref<16x192xbf16, #tpu.memory_space<vmem>>, vector<16x16xbf16>
    %9 = vector.shape_cast %8 : vector<16x16xbf16> to vector<2x8x16xbf16>
    %c0_9 = arith.constant 0 : index
    %c64 = arith.constant 64 : index
    %10 = vector.load %arg7[%c0_9, %c64] : memref<16x192xbf16, #tpu.memory_space<vmem>>, vector<16x16xbf16>
    %11 = vector.shape_cast %10 : vector<16x16xbf16> to vector<2x8x16xbf16>
    %c0_10 = arith.constant 0 : index
    %c128 = arith.constant 128 : index
    %12 = vector.load %arg7[%c0_10, %c128] : memref<16x192xbf16, #tpu.memory_space<vmem>>, vector<16x16xbf16>
    %13 = vector.shape_cast %12 : vector<16x16xbf16> to vector<2x8x16xbf16>
    "tpu.trace_start"() <{level = 10 : i32, message = "bqd,bkd->bqk"}> : () -> ()
    %cst_11 = arith.constant dense<0.000000e+00> : vector<2x8x8xf32>
    %14 = tpu.matmul %9, %11, %cst_11 {dimension_numbers = #tpu.dot_dimension_numbers<[2], [2], [1], [1], [0, 0, 0, 1, 1, 1], [0], [0]>} : vector<2x8x16xbf16>, vector<2x8x16xbf16>, vector<2x8x8xf32> -> vector<2x8x8xf32>
    "tpu.trace_stop"() : () -> ()
    %cst_12 = arith.constant dense<0xFF800000> : vector<2x8xf32>
    %15 = vector.multi_reduction <maximumf>, %14, %cst_12 [2] : vector<2x8x8xf32> to vector<2x8xf32>
    %16 = vector.shape_cast %15 : vector<2x8xf32> to vector<2x8x1xf32>
    %17 = vector.broadcast %16 : vector<2x8x1xf32> to vector<2x8x8xf32>
    %18 = arith.subf %14, %17 : vector<2x8x8xf32>
    %19 = math.exp %18 : vector<2x8x8xf32>
    %cst_13 = arith.constant dense<0.000000e+00> : vector<2x8xf32>
    %20 = vector.multi_reduction <add>, %19, %cst_13 [2] : vector<2x8x8xf32> to vector<2x8xf32>
    %21 = vector.shape_cast %20 : vector<2x8xf32> to vector<2x8x1xf32>
    %22 = tpu.reciprocal %21 {approx = true} : vector<2x8x1xf32> -> vector<2x8x1xf32>
    %23 = vector.broadcast %22 : vector<2x8x1xf32> to vector<2x8x8xf32>
    %24 = arith.mulf %19, %23 : vector<2x8x8xf32>
    %25 = arith.truncf %24 : vector<2x8x8xf32> to vector<2x8x8xbf16>
    "tpu.trace_start"() <{level = 10 : i32, message = "bqk,bkd->bqd"}> : () -> ()
    %cst_14 = arith.constant dense<0.000000e+00> : vector<2x8x16xf32>
    %26 = tpu.matmul %25, %13, %cst_14 {dimension_numbers = #tpu.dot_dimension_numbers<[2], [1], [1], [2], [0, 0, 0, 1, 1, 2], [0], [0]>} : vector<2x8x8xbf16>, vector<2x8x16xbf16>, vector<2x8x16xf32> -> vector<2x8x16xf32>
    "tpu.trace_stop"() : () -> ()
    %27 = vector.shape_cast %26 : vector<2x8x16xf32> to vector<16x16xf32>
    %28 = arith.truncf %27 : vector<16x16xf32> to vector<16x16xbf16>
    %c0_15 = arith.constant 0 : index
    %c0_16 = arith.constant 0 : index
    %29 = vector.load %arg8[%c0_15, %c0_16] : memref<16x64xbf16, #tpu.memory_space<vmem>>, vector<16x16xbf16>
    tpu.vector_store %arg8[%c0_15, %c0_16], %28 {strides = array<i32>} : memref<16x64xbf16, #tpu.memory_space<vmem>>, vector<16x16xbf16>,
    %c0_17 = arith.constant 0 : index
    %c16 = arith.constant 16 : index
    %30 = vector.load %arg7[%c0_17, %c16] : memref<16x192xbf16, #tpu.memory_space<vmem>>, vector<16x16xbf16>
    %31 = vector.shape_cast %30 : vector<16x16xbf16> to vector<2x8x16xbf16>
    %c0_18 = arith.constant 0 : index
    %c80 = arith.constant 80 : index
    %32 = vector.load %arg7[%c0_18, %c80] : memref<16x192xbf16, #tpu.memory_space<vmem>>, vector<16x16xbf16>
    %33 = vector.shape_cast %32 : vector<16x16xbf16> to vector<2x8x16xbf16>
    %c0_19 = arith.constant 0 : index
    %c144 = arith.constant 144 : index
    %34 = vector.load %arg7[%c0_19, %c144] : memref<16x192xbf16, #tpu.memory_space<vmem>>, vector<16x16xbf16>
    %35 = vector.shape_cast %34 : vector<16x16xbf16> to vector<2x8x16xbf16>
    "tpu.trace_start"() <{level = 10 : i32, message = "bqd,bkd->bqk"}> : () -> ()
    %cst_20 = arith.constant dense<0.000000e+00> : vector<2x8x8xf32>
    %36 = tpu.matmul %31, %33, %cst_20 {dimension_numbers = #tpu.dot_dimension_numbers<[2], [2], [1], [1], [0, 0, 0, 1, 1, 1], [0], [0]>} : vector<2x8x16xbf16>, vector<2x8x16xbf16>, vector<2x8x8xf32> -> vector<2x8x8xf32>
    "tpu.trace_stop"() : () -> ()
    %cst_21 = arith.constant dense<0xFF800000> : vector<2x8xf32>
    %37 = vector.multi_reduction <maximumf>, %36, %cst_21 [2] : vector<2x8x8xf32> to vector<2x8xf32>
    %38 = vector.shape_cast %37 : vector<2x8xf32> to vector<2x8x1xf32>
    %39 = vector.broadcast %38 : vector<2x8x1xf32> to vector<2x8x8xf32>
    %40 = arith.subf %36, %39 : vector<2x8x8xf32>
    %41 = math.exp %40 : vector<2x8x8xf32>
    %cst_22 = arith.constant dense<0.000000e+00> : vector<2x8xf32>
    %42 = vector.multi_reduction <add>, %41, %cst_22 [2] : vector<2x8x8xf32> to vector<2x8xf32>
    %43 = vector.shape_cast %42 : vector<2x8xf32> to vector<2x8x1xf32>
    %44 = tpu.reciprocal %43 {approx = true} : vector<2x8x1xf32> -> vector<2x8x1xf32>
    %45 = vector.broadcast %44 : vector<2x8x1xf32> to vector<2x8x8xf32>
    %46 = arith.mulf %41, %45 : vector<2x8x8xf32>
    %47 = arith.truncf %46 : vector<2x8x8xf32> to vector<2x8x8xbf16>
    "tpu.trace_start"() <{level = 10 : i32, message = "bqk,bkd->bqd"}> : () -> ()
    %cst_23 = arith.constant dense<0.000000e+00> : vector<2x8x16xf32>
    %48 = tpu.matmul %47, %35, %cst_23 {dimension_numbers = #tpu.dot_dimension_numbers<[2], [1], [1], [2], [0, 0, 0, 1, 1, 2], [0], [0]>} : vector<2x8x8xbf16>, vector<2x8x16xbf16>, vector<2x8x16xf32> -> vector<2x8x16xf32>
    "tpu.trace_stop"() : () -> ()
    %49 = vector.shape_cast %48 : vector<2x8x16xf32> to vector<16x16xf32>
    %50 = arith.truncf %49 : vector<16x16xf32> to vector<16x16xbf16>
    %c0_24 = arith.constant 0 : index
    %c16_25 = arith.constant 16 : index
    %51 = vector.load %arg8[%c0_24, %c16_25] : memref<16x64xbf16, #tpu.memory_space<vmem>>, vector<16x16xbf16>
    tpu.vector_store %arg8[%c0_24, %c16_25], %50 {strides = array<i32>} : memref<16x64xbf16, #tpu.memory_space<vmem>>, vector<16x16xbf16>,
    %c0_26 = arith.constant 0 : index
    %c32 = arith.constant 32 : index
    %52 = vector.load %arg7[%c0_26, %c32] : memref<16x192xbf16, #tpu.memory_space<vmem>>, vector<16x16xbf16>
    %53 = vector.shape_cast %52 : vector<16x16xbf16> to vector<2x8x16xbf16>
    %c0_27 = arith.constant 0 : index
    %c96 = arith.constant 96 : index
    %54 = vector.load %arg7[%c0_27, %c96] : memref<16x192xbf16, #tpu.memory_space<vmem>>, vector<16x16xbf16>
    %55 = vector.shape_cast %54 : vector<16x16xbf16> to vector<2x8x16xbf16>
    %c0_28 = arith.constant 0 : index
    %c160 = arith.constant 160 : index
    %56 = vector.load %arg7[%c0_28, %c160] : memref<16x192xbf16, #tpu.memory_space<vmem>>, vector<16x16xbf16>
    %57 = vector.shape_cast %56 : vector<16x16xbf16> to vector<2x8x16xbf16>
    "tpu.trace_start"() <{level = 10 : i32, message = "bqd,bkd->bqk"}> : () -> ()
    %cst_29 = arith.constant dense<0.000000e+00> : vector<2x8x8xf32>
    %58 = tpu.matmul %53, %55, %cst_29 {dimension_numbers = #tpu.dot_dimension_numbers<[2], [2], [1], [1], [0, 0, 0, 1, 1, 1], [0], [0]>} : vector<2x8x16xbf16>, vector<2x8x16xbf16>, vector<2x8x8xf32> -> vector<2x8x8xf32>
    "tpu.trace_stop"() : () -> ()
    %cst_30 = arith.constant dense<0xFF800000> : vector<2x8xf32>
    %59 = vector.multi_reduction <maximumf>, %58, %cst_30 [2] : vector<2x8x8xf32> to vector<2x8xf32>
    %60 = vector.shape_cast %59 : vector<2x8xf32> to vector<2x8x1xf32>
    %61 = vector.broadcast %60 : vector<2x8x1xf32> to vector<2x8x8xf32>
    %62 = arith.subf %58, %61 : vector<2x8x8xf32>
    %63 = math.exp %62 : vector<2x8x8xf32>
    %cst_31 = arith.constant dense<0.000000e+00> : vector<2x8xf32>
    %64 = vector.multi_reduction <add>, %63, %cst_31 [2] : vector<2x8x8xf32> to vector<2x8xf32>
    %65 = vector.shape_cast %64 : vector<2x8xf32> to vector<2x8x1xf32>
    %66 = tpu.reciprocal %65 {approx = true} : vector<2x8x1xf32> -> vector<2x8x1xf32>
    %67 = vector.broadcast %66 : vector<2x8x1xf32> to vector<2x8x8xf32>
    %68 = arith.mulf %63, %67 : vector<2x8x8xf32>
    %69 = arith.truncf %68 : vector<2x8x8xf32> to vector<2x8x8xbf16>
    "tpu.trace_start"() <{level = 10 : i32, message = "bqk,bkd->bqd"}> : () -> ()
    %cst_32 = arith.constant dense<0.000000e+00> : vector<2x8x16xf32>
    %70 = tpu.matmul %69, %57, %cst_32 {dimension_numbers = #tpu.dot_dimension_numbers<[2], [1], [1], [2], [0, 0, 0, 1, 1, 2], [0], [0]>} : vector<2x8x8xbf16>, vector<2x8x16xbf16>, vector<2x8x16xf32> -> vector<2x8x16xf32>
    "tpu.trace_stop"() : () -> ()
    %71 = vector.shape_cast %70 : vector<2x8x16xf32> to vector<16x16xf32>
    %72 = arith.truncf %71 : vector<16x16xf32> to vector<16x16xbf16>
    %c0_33 = arith.constant 0 : index
    %c32_34 = arith.constant 32 : index
    %73 = vector.load %arg8[%c0_33, %c32_34] : memref<16x64xbf16, #tpu.memory_space<vmem>>, vector<16x16xbf16>
    tpu.vector_store %arg8[%c0_33, %c32_34], %72 {strides = array<i32>} : memref<16x64xbf16, #tpu.memory_space<vmem>>, vector<16x16xbf16>,
    %c0_35 = arith.constant 0 : index
    %c48 = arith.constant 48 : index
    %74 = vector.load %arg7[%c0_35, %c48] : memref<16x192xbf16, #tpu.memory_space<vmem>>, vector<16x16xbf16>
    %75 = vector.shape_cast %74 : vector<16x16xbf16> to vector<2x8x16xbf16>
    %c0_36 = arith.constant 0 : index
    %c112 = arith.constant 112 : index
    %76 = vector.load %arg7[%c0_36, %c112] : memref<16x192xbf16, #tpu.memory_space<vmem>>, vector<16x16xbf16>
    %77 = vector.shape_cast %76 : vector<16x16xbf16> to vector<2x8x16xbf16>
    %c0_37 = arith.constant 0 : index
    %c176 = arith.constant 176 : index
    %78 = vector.load %arg7[%c0_37, %c176] : memref<16x192xbf16, #tpu.memory_space<vmem>>, vector<16x16xbf16>
    %79 = vector.shape_cast %78 : vector<16x16xbf16> to vector<2x8x16xbf16>
    "tpu.trace_start"() <{level = 10 : i32, message = "bqd,bkd->bqk"}> : () -> ()
    %cst_38 = arith.constant dense<0.000000e+00> : vector<2x8x8xf32>
    %80 = tpu.matmul %75, %77, %cst_38 {dimension_numbers = #tpu.dot_dimension_numbers<[2], [2], [1], [1], [0, 0, 0, 1, 1, 1], [0], [0]>} : vector<2x8x16xbf16>, vector<2x8x16xbf16>, vector<2x8x8xf32> -> vector<2x8x8xf32>
    "tpu.trace_stop"() : () -> ()
    %cst_39 = arith.constant dense<0xFF800000> : vector<2x8xf32>
    %81 = vector.multi_reduction <maximumf>, %80, %cst_39 [2] : vector<2x8x8xf32> to vector<2x8xf32>
    %82 = vector.shape_cast %81 : vector<2x8xf32> to vector<2x8x1xf32>
    %83 = vector.broadcast %82 : vector<2x8x1xf32> to vector<2x8x8xf32>
    %84 = arith.subf %80, %83 : vector<2x8x8xf32>
    %85 = math.exp %84 : vector<2x8x8xf32>
    %cst_40 = arith.constant dense<0.000000e+00> : vector<2x8xf32>
    %86 = vector.multi_reduction <add>, %85, %cst_40 [2] : vector<2x8x8xf32> to vector<2x8xf32>
    %87 = vector.shape_cast %86 : vector<2x8xf32> to vector<2x8x1xf32>
    %88 = tpu.reciprocal %87 {approx = true} : vector<2x8x1xf32> -> vector<2x8x1xf32>
    %89 = vector.broadcast %88 : vector<2x8x1xf32> to vector<2x8x8xf32>
    %90 = arith.mulf %85, %89 : vector<2x8x8xf32>
    %91 = arith.truncf %90 : vector<2x8x8xf32> to vector<2x8x8xbf16>
    "tpu.trace_start"() <{level = 10 : i32, message = "bqk,bkd->bqd"}> : () -> ()
    %cst_41 = arith.constant dense<0.000000e+00> : vector<2x8x16xf32>
    %92 = tpu.matmul %91, %79, %cst_41 {dimension_numbers = #tpu.dot_dimension_numbers<[2], [1], [1], [2], [0, 0, 0, 1, 1, 2], [0], [0]>} : vector<2x8x8xbf16>, vector<2x8x16xbf16>, vector<2x8x16xf32> -> vector<2x8x16xf32>
    "tpu.trace_stop"() : () -> ()
    %93 = vector.shape_cast %92 : vector<2x8x16xf32> to vector<16x16xf32>
    %94 = arith.truncf %93 : vector<16x16xf32> to vector<16x16xbf16>
    %c0_42 = arith.constant 0 : index
    %c48_43 = arith.constant 48 : index
    %95 = vector.load %arg8[%c0_42, %c48_43] : memref<16x64xbf16, #tpu.memory_space<vmem>>, vector<16x16xbf16>
    tpu.vector_store %arg8[%c0_42, %c48_43], %94 {strides = array<i32>} : memref<16x64xbf16, #tpu.memory_space<vmem>>, vector<16x16xbf16>,
    %c0_44 = arith.constant 0 : index
    %c0_45 = arith.constant 0 : index
    %96 = vector.load %arg8[%c0_44, %c0_45] : memref<16x64xbf16, #tpu.memory_space<vmem>>, vector<16x64xbf16>
    %c0_46 = arith.constant 0 : index
    %c0_47 = arith.constant 0 : index
    %97 = vector.load %arg4[%c0_46, %c0_47] : memref<64x32xbf16, #tpu.memory_space<vmem>>, vector<64x32xbf16>
    %cst_48 = arith.constant dense<0.000000e+00> : vector<16x32xf32>
    %98 = tpu.matmul %96, %97, %cst_48 {dimension_numbers = #tpu.dot_dimension_numbers<[1], [0], [0], [1], [0, 0, 1, 1], [], []>} : vector<16x64xbf16>, vector<64x32xbf16>, vector<16x32xf32> -> vector<16x32xf32>
    %c0_49 = arith.constant 0 : index
    %c0_50 = arith.constant 0 : index
    %99 = vector.load %arg5[%c0_49, %c0_50] : memref<1x32xf32, #tpu.memory_space<vmem>>, vector<1x32xf32>
    %100 = vector.broadcast %99 : vector<1x32xf32> to vector<16x32xf32>
    %101 = arith.addf %98, %100 : vector<16x32xf32>
    %c0_51 = arith.constant 0 : index
    %c0_52 = arith.constant 0 : index
    %102 = vector.load %arg6[%c0_51, %c0_52] : memref<16x32xf32, #tpu.memory_space<vmem>>, vector<16x32xf32>
    tpu.vector_store %arg6[%c0_51, %c0_52], %101 {strides = array<i32>} : memref<16x32xf32, #tpu.memory_space<vmem>>, vector<16x32xf32>,
    return
  }
  func.func @transform_0(%arg0: i32) -> (i32, i32) {
    %c0_i32 = arith.constant 0 : i32
    %c0_i32_0 = arith.constant 0 : i32
    return %arg0, %c0_i32 : i32, i32
  }
  func.func @transform_1(%arg0: i32) -> (i32, i32) {
    %c0_i32 = arith.constant 0 : i32
    %c0_i32_0 = arith.constant 0 : i32
    %c0_i32_1 = arith.constant 0 : i32
    return %c0_i32, %c0_i32_0 : i32, i32
  }
  func.func @transform_2(%arg0: i32) -> (i32, i32) {
    %c0_i32 = arith.constant 0 : i32
    %c0_i32_0 = arith.constant 0 : i32
    %c0_i32_1 = arith.constant 0 : i32
    return %c0_i32, %c0_i32_0 : i32, i32
  }
  func.func @transform_3(%arg0: i32) -> (i32, i32) {
    %c0_i32 = arith.constant 0 : i32
    %c0_i32_0 = arith.constant 0 : i32
    %c0_i32_1 = arith.constant 0 : i32
    return %c0_i32, %c0_i32_0 : i32, i32
  }
  func.func @transform_4(%arg0: i32) -> (i32, i32) {
    %c0_i32 = arith.constant 0 : i32
    %c0_i32_0 = arith.constant 0 : i32
    %c0_i32_1 = arith.constant 0 : i32
    return %c0_i32, %c0_i32_0 : i32, i32
  }
  func.func @transform_5(%arg0: i32) -> (i32, i32) {
    %c0_i32 = arith.constant 0 : i32
    %c0_i32_0 = arith.constant 0 : i32
    return %arg0, %c0_i32 : i32, i32
  }
}

</mosaic_0001>

<bundles_post_ra>
// kernel: tpu_custom_call.1
= control target key start
LH: loop header
LB: loop body
LE: loop exit
PB: predicated region body
PF: predicated region fallthrough
CT: control target
= control target key end

     0   :  { %v1438_v2 = vmov 0   ;;  %vm65_vm0 = vcmask 261120   ;;  %s1696_s0 = inlined_call_operand.vmem [shape: bf16[16,32], index: 0, kind: input, shape index: {}]   ;;  %s1697_s1 = inlined_call_operand.vmem [shape: bf16[32,192], index: 1, kind: input, shape index: {}]   ;;  %s1698_s2 = inlined_call_operand.vmem [shape: f32[1,192], index: 2, kind: input, shape index: {}]   ;;  %s1699_s3 = inlined_call_operand.vmem [shape: bf16[64,32], index: 3, kind: input, shape index: {}]   ;;  %s1700_s4 = inlined_call_operand.vmem [shape: f32[1,32], index: 4, kind: input, shape index: {}]   ;;  %s1701_s5 = inlined_call_operand.hbm [shape: f32[16,32], index: 5, kind: output, shape index: {}]  }
   0x1   :  { %v1367_v0 = vld [vmem:[%s1697_s1 + $0x4] ss:$8 sps:$4 sm:$0xff]   ;;  %v1369_v1 = vld [vmem:[%s1697_s1] ss:$8 sps:$4 sm:$0xff]   ;;  %101 = vmatprep.mubr.bf16.mxu0 %v1438_v2  ;;  %v1370_v3 = vld [vmem:[%s1697_s1 + $0x14] ss:$8 sps:$4 sm:$0xff]  }
   0x2   :  { %69 = vmatprep.subr.bf16.mxu0 %v1367_v0  ;;  %v1372_v4 = vld [vmem:[%s1697_s1 + $0x10] ss:$8 sps:$4 sm:$0xff]   ;;  %v1373_v5 = vld [vmem:[%s1696_s0] sm:$0xff]  }
   0x3   :  { %70 = vmatpush1.bf16.msra.mxu0 %v1369_v1 }
   0x4   :  { %71 = vmatprep.subr.bf16.mxu0 %v1370_v3 }
   0x7   :  { %72 = vmatpush1.bf16.msra.mxu0 %v1372_v4 }
   0x8   :  { %10 = vsyncpa [#allocation5], 0  ;;  %v30_v6 = vlaneseq  ;;  %v28_v9 = vld [vmem:[%s1698_s2] sm:$0x3]  ;;  %v1439_v11 = vmov 0.0   ;;  %vm1440_vm1 = vmmov 0  }
   0x9   :  { %1246 = vmatprep.subr.bf16.mxu1 %v1439_v11  ;;  %1252 = vmatprep.subr.bf16.mxu0 %v1439_v11  ;;  %vm115_vm2 = vcmask 523264   ;;  %s1441_s0 = smov 64   ;;  %vm131_vm3 = vcmask 130048   ;;  %vm254_vm4 = vcmask 1043456   ;;  %vm226_vm5 = vcmask 64512   ;;  %s1442_s1 = smov 48  }
   0xa   :  { %1170 = vmatmul.mubr.msk.bf16.vlgmr.msra.gmra.mrb[0].mxu0 %vm65_vm0, %v1373_v5  ;;  %v31_v7 = vshrl.u32 %v30_v6, 7  ;;  %1248 = vmatprep.mubr.msk.bf16.mxu1 %vm1440_vm1, %v1439_v11  ;;  %s1443_s2 = smov 112   ;;  %s1444_s30 = smov 32   ;;  %vm583_vm6 = vcmask 261248   ;;  %vm822_vm7 = vcmask 392448   ;;  %vm1061_vm8 = vcmask 523648  }
   0xb   :  { %1254 = vmatprep.mubr.msk.bf16.mxu0 %vm1440_vm1, %v1439_v11  ;;  %s1445_s6 = smov 96   ;;  %s1446_s7 = smov 16  }
   0xc   :  { %v32_v8 = vsub.s32 0, %v31_v7  ;;  %v36_v10 = vsub.s32 1, %v31_v7  ;;  %s1447_s8 = smov 80   ;;  %s1448_s18 = smov [#allocation4]  }
   0xd   :  { %s1154_s19 = sshll.u32 %s1448_s18, 4  ;;  %s1155_s19 = int_to_ptr.vmem [resolvable:$true] %s1154_s19 }
   0xe   :  { %v33_v12 = vrot.slane %v28_v9, %v32_v8  ;;  %v37_v14 = vrot.slane %v28_v9, %v36_v10  ;;  %s1414_s20 = scalar_lea.vmem %s1155_s19, 256  ;;  %p1419_p1 = scmp.lt.s32.totalorder %s1155_s19, %s1155_s19 }
   0xf   :  { %p1415_p0 = scmp.ne.s32.totalorder %s1155_s19, %s1414_s20  ;;  %p1420_p2 = scmp.lt.s32.totalorder %s1414_s20, %s1414_s20 }
  0x11   :  { %p1421_p3 = por %p1420_p2, %p1419_p1 }
  0x13   :  { %p1422_p4 = pnand %p1421_p3, %p1415_p0 }
  0xdd   :  { %v103_v13 = vpop.f32.mrb[0].mxu0 }
  0xde   :  { %v105_v15 = vpop.f32.mrb[1].mxu0  ;;  %v104_v17 = vadd.f32 %v103_v13, %v33_v12 }
  0xdf   :  { %v107_v16 = vpop.f32.mrb[2].mxu0  ;;  %v106_v20 = vadd.f32 %v105_v15, %v37_v14 }
  0xe0   :  { %v108_v18 = vadd.f32 %v107_v16, %v33_v12  ;;  %v109_v19 = vpop.f32.mrb[3].mxu0  ;;  %v1506_v23 = vpack.c.bf16 %v104_v17, %v104_v17 }
  0xe1   :  { %v110_v21 = vadd.f32 %v109_v19, %v37_v14 }
  0xe2   :  { %129 = vrot.lane.b32.xlu0 %v1506_v23, %s1441_s0  ;;  %v1510_v24 = vpack.c.bf16 %v108_v18, %v108_v18 }
  0xe3   :  { %v113_v22 = vpack.c.bf16 %v110_v21, %v106_v20 }
  0xe5   :  { %116 = vst.msk [vmem:[#allocation2 + $0x8] sm:$0xff] %vm115_vm2, %v113_v22 }
  0xe6   :  { %178 = vrot.lane.b32.xlu0 %v1510_v24, %s1441_s0 }
  0xec   :  { %v123_v27 = vld [vmem:[#allocation2 + $0x8] sm:$0xff] }
  0xed   :  { %v1516_v30 = vcombine.low %v123_v27, %v123_v27  ;;  %v1523_v32 = vcombine.high %v123_v27, %v123_v27 }
  0xef   :  { %v256_v31 = vsel %vm254_vm4, %v1516_v30, 0  ;;  %v302_v33 = vsel %vm254_vm4, %v1523_v32, 0 }
 0x154   :  { %v130_v25 = vpop.permute.xlu0 %129 }
 0x155   :  { %v136_v26 = vsel %vm131_vm3, %v130_v25, 0 }
 0x156   :  { %1247 = vmatpush3.bf16.xpose.msra.mxu1 %v136_v26 }
 0x157   :  { %1258 = vmatprep.subr.bf16.mxu1 %v1439_v11 }
 0x158   :  { %v179_v28 = vpop.permute.xlu0 %178 }
 0x159   :  { %v184_v29 = vsel %vm131_vm3, %v179_v28, 0 }
 0x15a   :  { %1253 = vmatpush3.bf16.xpose.msra.mxu0 %v184_v29 }
 0x15b   :  { %1264 = vmatprep.subr.bf16.mxu0 %v1439_v11 }
 0x15d   :  { %1249 = vmatmul.mubr.msk.bf16.vlgmr.msra.gmra.mrb[0].mxu1 %vm131_vm3, %v1506_v23 }
 0x15e   :  { %1259 = vmatpush3.bf16.msra.mxu1 %v256_v31  ;;  %1260 = vmatprep.mubr.msk.bf16.mxu1 %vm1440_vm1, %v1439_v11 }
 0x15f   :  { %1270 = vmatprep.subr.bf16.mxu1 %v1439_v11 }
 0x161   :  { %1255 = vmatmul.mubr.msk.bf16.vlgmr.msra.gmra.mrb[4].mxu0 %vm131_vm3, %v1510_v24 }
 0x162   :  { %1265 = vmatpush3.bf16.msra.mxu0 %v302_v33  ;;  %1266 = vmatprep.mubr.msk.bf16.mxu0 %vm1440_vm1, %v1439_v11 }
 0x163   :  { %1276 = vmatprep.subr.bf16.mxu0 %v1439_v11 }
 0x230   :  { %v172_v34 = vpop.f32.mrb[0].mxu1 }
 0x231   :  { %v1250_v35 = vpop.f32.mrb[1].mxu1  ;;  %v227_v36 = vsel %vm226_vm5, %v172_v34, -inf }
 0x232   :  { %228 = vmax.xlane.f32.xlu1 %v227_v36  ;;  %v175_v37 = vpop.f32.mrb[2].mxu1 }
 0x233   :  { %v1251_v38 = vpop.f32.mrb[3].mxu1 }
 0x234   :  { %v220_v39 = vpop.f32.mrb[4].mxu0 }
 0x235   :  { %v1256_v40 = vpop.f32.mrb[5].mxu0  ;;  %v230_v41 = vsel %vm226_vm5, %v220_v39, -inf }
 0x236   :  { %231 = vmax.xlane.f32.xlu1 %v230_v41  ;;  %v223_v42 = vpop.f32.mrb[6].mxu0 }
 0x237   :  { %v1257_v43 = vpop.f32.mrb[7].mxu0 }
 0x247   :  { %357 = vrot.lane.b32.xlu1 %v1506_v23, %s1442_s1 }
 0x24b   :  { %408 = vrot.lane.b32.xlu1 %v1510_v24, %s1442_s1 }
 0x2bf   :  { %v229_v44 = vpop.xlane.xlu1 %228 }
 0x2c0   :  { %v233_v45 = vsub.f32 %v172_v34, %v229_v44 }
 0x2c2   :  { %v235_v46 = vmul.f32 1.442695, %v233_v45 }
 0x2c3   :  { %v232_v47 = vpop.xlane.xlu1 %231 }
 0x2c4   :  { %1380 = vpow2.f32 %v235_v46  ;;  %v234_v48 = vsub.f32 %v220_v39, %v232_v47 }
 0x2c6   :  { %v237_v49 = vmul.f32 1.442695, %v234_v48 }
 0x2c7   :  { %v358_v54 = vpop.permute.xlu1 %357 }
 0x2c8   :  { %1382 = vpow2.f32 %v237_v49  ;;  %v363_v62 = vsel %vm131_vm3, %v358_v54, 0 }
 0x2cb   :  { %v409_v55 = vpop.permute.xlu1 %408 }
 0x2cc   :  { %v414_v1 = vsel %vm131_vm3, %v409_v55, 0 }
 0x2ce   :  { %v1381_v50 = vpop.eup %1380 }
 0x2cf   :  { %v239_v51 = vsel %vm226_vm5, %v1381_v50, 0.0 }
 0x2d0   :  { %240 = vadd.xlane.f32.xlu0 %v239_v51 }
 0x2d2   :  { %v1383_v52 = vpop.eup %1382 }
 0x2d3   :  { %v242_v53 = vsel %vm226_vm5, %v1383_v52, 0.0 }
 0x2d4   :  { %243 = vadd.xlane.f32.xlu1 %v242_v53 }
 0x2e5   :  { %355 = vrot.lane.b32.xlu1 %v1506_v23, %s1443_s2 }
 0x2e9   :  { %406 = vrot.lane.b32.xlu1 %v1510_v24, %s1443_s2 }
 0x35d   :  { %v241_v56 = vpop.xlane.xlu0 %240 }
 0x35e   :  { %1384 = vrcp.f32 %v241_v56 }
 0x361   :  { %v244_v57 = vpop.xlane.xlu1 %243 }
 0x362   :  { %1386 = vrcp.f32 %v244_v57 }
 0x365   :  { %v356_v2 = vpop.permute.xlu1 %355 }
 0x368   :  { %v1385_v58 = vpop.eup %1384 }
 0x369   :  { %v247_v59 = vmul.f32 %v1385_v58, %v1381_v50  ;;  %v407_v3 = vpop.permute.xlu1 %406 }
 0x36b   :  { %v249_v60 = vpack.c.bf16 %v247_v59, %v247_v59 }
 0x36c   :  { %v1387_v61 = vpop.eup %1386 }
 0x36d   :  { %v248_v63 = vmul.f32 %v1387_v61, %v1383_v52  ;;  %1261 = vmatmul.mubr.msk.bf16.vlgmr.msra.gmra.mrb[4].mxu1 %vm226_vm5, %v249_v60 }
 0x36e   :  { %1271 = vmatpush3.bf16.xpose.msra.mxu1 %v363_v62  ;;  %1272 = vmatprep.mubr.msk.bf16.mxu1 %vm1440_vm1, %v1439_v11 }
 0x36f   :  { %v250_v0 = vpack.c.bf16 %v248_v63, %v248_v63  ;;  %1282 = vmatprep.subr.bf16.mxu1 %v1439_v11 }
 0x371   :  { %1267 = vmatmul.mubr.msk.bf16.vlgmr.msra.gmra.mrb[8].mxu0 %vm226_vm5, %v250_v0 }
 0x372   :  { %1277 = vmatpush3.bf16.xpose.msra.mxu0 %v414_v1  ;;  %1278 = vmatprep.mubr.msk.bf16.mxu0 %vm1440_vm1, %v1439_v11 }
 0x373   :  { %1288 = vmatprep.subr.bf16.mxu0 %v1439_v11 }
 0x375   :  { %1273 = vmatmul.mubr.msk.bf16.vlgmr.msra.gmra.mrb[8].mxu1 %vm131_vm3, %v356_v2 }
 0x376   :  { %1284 = vmatprep.mubr.msk.bf16.mxu1 %vm1440_vm1, %v1439_v11 }
 0x379   :  { %1279 = vmatmul.mubr.msk.bf16.vlgmr.msra.gmra.mrb[12].mxu0 %vm131_vm3, %v407_v3 }
 0x37a   :  { %1290 = vmatprep.mubr.msk.bf16.mxu0 %vm1440_vm1, %v1439_v11 }
 0x440   :  { %v292_v4 = vpop.f32.mrb[4].mxu1 }
 0x441   :  { %v1262_v5 = vpop.f32.mrb[5].mxu1 }
 0x442   :  { %v295_v6 = vpop.f32.mrb[6].mxu1 }
 0x443   :  { %v1263_v7 = vpop.f32.mrb[7].mxu1 }
 0x444   :  { %v338_v8 = vpop.f32.mrb[8].mxu0 }
 0x445   :  { %v344_v9 = vpack.c.bf16 %v338_v8, %v292_v4  ;;  %v1268_v10 = vpop.f32.mrb[9].mxu0 }
 0x446   :  { %v341_v12 = vpop.f32.mrb[10].mxu0 }
 0x447   :  { %345 = vst.msk [vmem:[#allocation3] sm:$0xff] %vm131_vm3, %v344_v9  ;;  %v1269_v13 = vpop.f32.mrb[11].mxu0 }
 0x448   :  { %v399_v14 = vpop.f32.mrb[8].mxu1 }
 0x449   :  { %v1274_v15 = vpop.f32.mrb[9].mxu1  ;;  %v456_v16 = vsel %vm226_vm5, %v399_v14, -inf }
 0x44a   :  { %457 = vmax.xlane.f32.xlu0 %v456_v16  ;;  %v402_v17 = vpop.f32.mrb[10].mxu1 }
 0x44b   :  { %v1275_v18 = vpop.f32.mrb[11].mxu1 }
 0x44c   :  { %v450_v19 = vpop.f32.mrb[12].mxu0 }
 0x44d   :  { %v1280_v20 = vpop.f32.mrb[13].mxu0  ;;  %v459_v21 = vsel %vm226_vm5, %v450_v19, -inf }
 0x44e   :  { %460 = vmax.xlane.f32.xlu1 %v459_v21  ;;  %v453_v22 = vpop.f32.mrb[14].mxu0 }
 0x44f   :  { %v1281_v25 = vpop.f32.mrb[15].mxu0 }
 0x45f   :  { %647 = vrot.lane.b32.xlu1 %v1510_v24, %s1444_s30 }
 0x460   :  { %481 = vrot.lane.b32.xlu0 %v1516_v30, %s1443_s2 }
 0x464   :  { %530 = vrot.lane.b32.xlu0 %v1523_v32, %s1443_s2 }
 0x4d7   :  { %v458_v26 = vpop.xlane.xlu0 %457 }
 0x4d8   :  { %v462_v27 = vsub.f32 %v399_v14, %v458_v26 }
 0x4da   :  { %v464_v28 = vmul.f32 1.442695, %v462_v27 }
 0x4db   :  { %v461_v29 = vpop.xlane.xlu1 %460  ;;  %v482_v31 = vpop.permute.xlu0 %481 }
 0x4dc   :  { %1388 = vpow2.f32 %v464_v28  ;;  %v463_v33 = vsub.f32 %v450_v19, %v461_v29  ;;  %v487_v34 = vsel %vm254_vm4, %v482_v31, 0 }
 0x4dd   :  { %1283 = vmatpush3.bf16.msra.mxu1 %v487_v34 }
 0x4de   :  { %v466_v35 = vmul.f32 1.442695, %v463_v33  ;;  %1294 = vmatprep.subr.bf16.mxu1 %v1439_v11 }
 0x4df   :  { %v531_v36 = vpop.permute.xlu0 %530  ;;  %v648_v51 = vpop.permute.xlu1 %647 }
 0x4e0   :  { %1390 = vpow2.f32 %v466_v35  ;;  %v536_v37 = vsel %vm254_vm4, %v531_v36, 0  ;;  %v653_v53 = vsel %vm131_vm3, %v648_v51, 0 }
 0x4e1   :  { %1289 = vmatpush3.bf16.msra.mxu0 %v536_v37 }
 0x4e2   :  { %1300 = vmatprep.subr.bf16.mxu0 %v1439_v11 }
 0x4e6   :  { %v1389_v38 = vpop.eup %1388 }
 0x4e7   :  { %v468_v39 = vsel %vm226_vm5, %v1389_v38, 0.0 }
 0x4e8   :  { %469 = vadd.xlane.f32.xlu0 %v468_v39 }
 0x4ea   :  { %v1391_v40 = vpop.eup %1390 }
 0x4eb   :  { %v471_v41 = vsel %vm226_vm5, %v1391_v40, 0.0 }
 0x4ec   :  { %472 = vadd.xlane.f32.xlu0 %v471_v41 }
 0x502   :  { %596 = vrot.lane.b32.xlu0 %v1506_v23, %s1444_s30 }
 0x506   :  { %594 = vrot.lane.b32.xlu0 %v1506_v23, %s1445_s6 }
 0x50a   :  { %645 = vrot.lane.b32.xlu0 %v1510_v24, %s1445_s6 }
 0x575   :  { %v470_v42 = vpop.xlane.xlu0 %469 }
 0x576   :  { %1392 = vrcp.f32 %v470_v42 }
 0x579   :  { %v473_v43 = vpop.xlane.xlu0 %472 }
 0x57a   :  { %1394 = vrcp.f32 %v473_v43 }
 0x57d   :  { %v597_v46 = vpop.permute.xlu0 %596 }
 0x57e   :  { %v602_v50 = vsel %vm131_vm3, %v597_v46, 0 }
 0x580   :  { %v1393_v44 = vpop.eup %1392 }
 0x581   :  { %v476_v45 = vmul.f32 %v1393_v44, %v1389_v38  ;;  %v595_v54 = vpop.permute.xlu0 %594 }
 0x583   :  { %v478_v47 = vpack.c.bf16 %v476_v45, %v476_v45 }
 0x584   :  { %v1395_v48 = vpop.eup %1394 }
 0x585   :  { %v477_v49 = vmul.f32 %v1395_v48, %v1391_v40  ;;  %1285 = vmatmul.mubr.msk.bf16.vlgmr.msra.gmra.mrb[12].mxu1 %vm226_vm5, %v478_v47  ;;  %v646_v55 = vpop.permute.xlu0 %645 }
 0x586   :  { %1295 = vmatpush3.bf16.xpose.msra.mxu1 %v602_v50  ;;  %1296 = vmatprep.mubr.msk.bf16.mxu1 %vm1440_vm1, %v1439_v11 }
 0x587   :  { %v479_v52 = vpack.c.bf16 %v477_v49, %v477_v49  ;;  %1306 = vmatprep.subr.bf16.mxu1 %v1439_v11 }
 0x589   :  { %1291 = vmatmul.mubr.msk.bf16.vlgmr.msra.gmra.mrb[16].mxu0 %vm226_vm5, %v479_v52 }
 0x58a   :  { %1301 = vmatpush3.bf16.xpose.msra.mxu0 %v653_v53  ;;  %1302 = vmatprep.mubr.msk.bf16.mxu0 %vm1440_vm1, %v1439_v11 }
 0x58b   :  { %1312 = vmatprep.subr.bf16.mxu0 %v1439_v11 }
 0x58d   :  { %1297 = vmatmul.mubr.msk.bf16.vlgmr.msra.gmra.mrb[16].mxu1 %vm131_vm3, %v595_v54 }
 0x58e   :  { %1308 = vmatprep.mubr.msk.bf16.mxu1 %vm1440_vm1, %v1439_v11 }
 0x591   :  { %1303 = vmatmul.mubr.msk.bf16.vlgmr.msra.gmra.mrb[20].mxu0 %vm131_vm3, %v646_v55 }
 0x592   :  { %1314 = vmatprep.mubr.msk.bf16.mxu0 %vm1440_vm1, %v1439_v11 }
 0x658   :  { %v1600_v56 = vpop.f32.mrb[12].mxu1 }
 0x659   :  { %v1286_v57 = vpop.f32.mrb[13].mxu1 }
 0x65a   :  { %v526_v58 = vpop.f32.mrb[14].mxu1 }
 0x65b   :  { %v1287_v59 = vpop.f32.mrb[15].mxu1 }
 0x65c   :  { %v1602_v60 = vpop.f32.mrb[16].mxu0 }
 0x65d   :  { %v578_v61 = vpack.c.bf16 %v1602_v60, %v1600_v56  ;;  %v1292_v62 = vpop.f32.mrb[17].mxu0 }
 0x65e   :  { %v575_v63 = vpop.f32.mrb[18].mxu0 }
 0x65f   :  { %v1293_v0 = vpop.f32.mrb[19].mxu0 }
 0x660   :  { %v638_v1 = vpop.f32.mrb[16].mxu1 }
 0x661   :  { %v1298_v2 = vpop.f32.mrb[17].mxu1  ;;  %v695_v3 = vsel %vm226_vm5, %v638_v1, -inf }
 0x662   :  { %696 = vmax.xlane.f32.xlu0 %v695_v3  ;;  %v641_v4 = vpop.f32.mrb[18].mxu1 }
 0x663   :  { %v1299_v5 = vpop.f32.mrb[19].mxu1 }
 0x664   :  { %v689_v6 = vpop.f32.mrb[20].mxu0 }
 0x665   :  { %v1304_v7 = vpop.f32.mrb[21].mxu0  ;;  %v698_v8 = vsel %vm226_vm5, %v689_v6, -inf }
 0x666   :  { %699 = vmax.xlane.f32.xlu1 %v698_v8  ;;  %v692_v9 = vpop.f32.mrb[22].mxu0 }
 0x667   :  { %v1305_v10 = vpop.f32.mrb[23].mxu0 }
 0x677   :  { %769 = vrot.lane.b32.xlu1 %v1523_v32, %s1445_s6 }
 0x678   :  { %720 = vrot.lane.b32.xlu0 %v1516_v30, %s1445_s6 }
 0x67b   :  { %835 = vrot.lane.b32.xlu1 %v1506_v23, %s1446_s7 }
 0x67f   :  { %833 = vrot.lane.b32.xlu1 %v1506_v23, %s1447_s8 }
 0x6ef   :  { %v697_v12 = vpop.xlane.xlu0 %696 }
 0x6f0   :  { %v701_v13 = vsub.f32 %v638_v1, %v697_v12 }
 0x6f2   :  { %v703_v14 = vmul.f32 1.442695, %v701_v13 }
 0x6f3   :  { %v700_v15 = vpop.xlane.xlu1 %699  ;;  %v721_v16 = vpop.permute.xlu0 %720 }
 0x6f4   :  { %1396 = vpow2.f32 %v703_v14  ;;  %v702_v17 = vsub.f32 %v689_v6, %v700_v15  ;;  %v726_v18 = vsel %vm254_vm4, %v721_v16, 0 }
 0x6f5   :  { %1307 = vmatpush3.bf16.msra.mxu1 %v726_v18 }
 0x6f6   :  { %v705_v19 = vmul.f32 1.442695, %v702_v17  ;;  %1318 = vmatprep.subr.bf16.mxu1 %v1439_v11 }
 0x6f7   :  { %v770_v20 = vpop.permute.xlu1 %769 }
 0x6f8   :  { %1398 = vpow2.f32 %v705_v19  ;;  %v775_v21 = vsel %vm254_vm4, %v770_v20, 0  ;;  %v1376_v20 = vld [vmem:[%s1699_s3] sm:$0xff]  }
 0x6f9   :  { %1313 = vmatpush3.bf16.msra.mxu0 %v775_v21  ;;  %v1377_v21 = vld [vmem:[%s1699_s3 + $0x8] sm:$0xff]  }
 0x6fa   :  { %1324 = vmatprep.subr.bf16.mxu0 %v1439_v11 }
 0x6fb   :  { %v836_v33 = vpop.permute.xlu1 %835 }
 0x6fc   :  { %v841_v36 = vsel %vm131_vm3, %v836_v33, 0 }
 0x6fe   :  { %v1397_v23 = vpop.eup %1396 }
 0x6ff   :  { %v707_v22 = vsel %vm226_vm5, %v1397_v23, 0.0  ;;  %v834_v40 = vpop.permute.xlu1 %833 }
 0x700   :  { %708 = vadd.xlane.f32.xlu0 %v707_v22  ;;  %v1379_v22 = vld [vmem:[%s1699_s3 + $0x18] sm:$0xff]  }
 0x702   :  { %v1399_v25 = vpop.eup %1398 }
 0x703   :  { %v710_v26 = vsel %vm226_vm5, %v1399_v25, 0.0 }
 0x704   :  { %711 = vadd.xlane.f32.xlu0 %v710_v26 }
 0x71a   :  { %886 = vrot.lane.b32.xlu0 %v1510_v24, %s1446_s7 }
 0x71e   :  { %884 = vrot.lane.b32.xlu0 %v1510_v24, %s1447_s8 }
 0x78d   :  { %v709_v27 = vpop.xlane.xlu0 %708 }
 0x78e   :  { %1400 = vrcp.f32 %v709_v27 }
 0x791   :  { %v712_v28 = vpop.xlane.xlu0 %711 }
 0x792   :  { %1402 = vrcp.f32 %v712_v28 }
 0x795   :  { %v887_v38 = vpop.permute.xlu0 %886 }
 0x796   :  { %v892_v39 = vsel %vm131_vm3, %v887_v38, 0 }
 0x798   :  { %v1401_v29 = vpop.eup %1400 }
 0x799   :  { %v715_v31 = vmul.f32 %v1401_v29, %v1397_v23  ;;  %v885_v41 = vpop.permute.xlu0 %884  ;;  %v1378_v23 = vld [vmem:[%s1699_s3 + $0x10] sm:$0xff]  }
 0x79b   :  { %v717_v34 = vpack.c.bf16 %v715_v31, %v715_v31 }
 0x79c   :  { %v1403_v35 = vpop.eup %1402 }
 0x79d   :  { %v716_v37 = vmul.f32 %v1403_v35, %v1399_v25  ;;  %1309 = vmatmul.mubr.msk.bf16.vlgmr.msra.gmra.mrb[20].mxu1 %vm226_vm5, %v717_v34 }
 0x79e   :  { %1319 = vmatpush3.bf16.xpose.msra.mxu1 %v841_v36  ;;  %1320 = vmatprep.mubr.msk.bf16.mxu1 %vm1440_vm1, %v1439_v11 }
 0x79f   :  { %v718_v24 = vpack.c.bf16 %v716_v37, %v716_v37  ;;  %1330 = vmatprep.subr.bf16.mxu1 %v1439_v11 }
 0x7a1   :  { %1315 = vmatmul.mubr.msk.bf16.vlgmr.msra.gmra.mrb[24].mxu0 %vm226_vm5, %v718_v24 }
 0x7a2   :  { %1325 = vmatpush3.bf16.xpose.msra.mxu0 %v892_v39  ;;  %1326 = vmatprep.mubr.msk.bf16.mxu0 %vm1440_vm1, %v1439_v11 }
 0x7a3   :  { %1336 = vmatprep.subr.bf16.mxu0 %v1439_v11 }
 0x7a5   :  { %1321 = vmatmul.mubr.msk.bf16.vlgmr.msra.gmra.mrb[24].mxu1 %vm131_vm3, %v834_v40 }
 0x7a6   :  { %1332 = vmatprep.mubr.msk.bf16.mxu1 %vm1440_vm1, %v1439_v11 }
 0x7a9   :  { %1327 = vmatmul.mubr.msk.bf16.vlgmr.msra.gmra.mrb[28].mxu0 %vm131_vm3, %v885_v41 }
 0x7aa   :  { %1338 = vmatprep.mubr.msk.bf16.mxu0 %vm1440_vm1, %v1439_v11 }
 0x870   :  { %v762_v42 = vpop.f32.mrb[20].mxu1 }
 0x871   :  { %v1310_v43 = vpop.f32.mrb[21].mxu1 }
 0x872   :  { %v765_v44 = vpop.f32.mrb[22].mxu1 }
 0x873   :  { %v1311_v45 = vpop.f32.mrb[23].mxu1 }
 0x874   :  { %v811_v46 = vpop.f32.mrb[24].mxu0 }
 0x875   :  { %v817_v47 = vpack.c.bf16 %v811_v46, %v762_v42  ;;  %v1316_v48 = vpop.f32.mrb[25].mxu0 }
 0x876   :  { %v814_v49 = vpop.f32.mrb[26].mxu0 }
 0x877   :  { %v1317_v50 = vpop.f32.mrb[27].mxu0 }
 0x878   :  { %v877_v51 = vpop.f32.mrb[24].mxu1 }
 0x879   :  { %v1322_v52 = vpop.f32.mrb[25].mxu1  ;;  %v934_v53 = vsel %vm226_vm5, %v877_v51, -inf }
 0x87a   :  { %935 = vmax.xlane.f32.xlu1 %v934_v53  ;;  %v880_v54 = vpop.f32.mrb[26].mxu1 }
 0x87b   :  { %v1323_v55 = vpop.f32.mrb[27].mxu1 }
 0x87c   :  { %v928_v57 = vpop.f32.mrb[28].mxu0 }
 0x87d   :  { %v1328_v58 = vpop.f32.mrb[29].mxu0  ;;  %v937_v59 = vsel %vm226_vm5, %v928_v57, -inf }
 0x87e   :  { %938 = vmax.xlane.f32.xlu0 %v937_v59  ;;  %v931_v62 = vpop.f32.mrb[30].mxu0 }
 0x87f   :  { %v1329_v63 = vpop.f32.mrb[31].mxu0 }
 0x907   :  { %v936_v0 = vpop.xlane.xlu1 %935 }
 0x908   :  { %v940_v1 = vsub.f32 %v877_v51, %v936_v0 }
 0x90a   :  { %v942_v2 = vmul.f32 1.442695, %v940_v1 }
 0x90b   :  { %v939_v3 = vpop.xlane.xlu0 %938 }
 0x90c   :  { %1404 = vpow2.f32 %v942_v2  ;;  %v941_v4 = vsub.f32 %v928_v57, %v939_v3 }
 0x90e   :  { %v944_v5 = vmul.f32 1.442695, %v941_v4 }
 0x910   :  { %1406 = vpow2.f32 %v944_v5 }
 0x916   :  { %v1405_v6 = vpop.eup %1404 }
 0x917   :  { %v946_v7 = vsel %vm226_vm5, %v1405_v6, 0.0 }
 0x918   :  { %947 = vadd.xlane.f32.xlu0 %v946_v7 }
 0x91a   :  { %v1407_v8 = vpop.eup %1406 }
 0x91b   :  { %v949_v9 = vsel %vm226_vm5, %v1407_v8, 0.0 }
 0x91c   :  { %950 = vadd.xlane.f32.xlu1 %v949_v9 }
 0x92d   :  { %1008 = vrot.lane.b32.xlu1 %v1523_v32, %s1447_s8 }
 0x92e   :  { %959 = vrot.lane.b32.xlu0 %v1516_v30, %s1447_s8 }
 0x931   :  { %580 = vrot.lane.b32.xlu1 %v578_v61, %s1446_s7 }
 0x932   :  { %819 = vrot.lane.b32.xlu0 %v817_v47, %s1444_s30 }
 0x9a5   :  { %v948_v10 = vpop.xlane.xlu0 %947 }
 0x9a6   :  { %1408 = vrcp.f32 %v948_v10 }
 0x9a9   :  { %v960_v12 = vpop.permute.xlu0 %959  ;;  %v951_v13 = vpop.xlane.xlu1 %950 }
 0x9aa   :  { %v965_v14 = vsel %vm254_vm4, %v960_v12, 0  ;;  %1410 = vrcp.f32 %v951_v13 }
 0x9ab   :  { %1331 = vmatpush3.bf16.msra.mxu1 %v965_v14 }
 0x9ac   :  { %1342 = vmatprep.subr.bf16.mxu1 %v1439_v11 }
 0x9ad   :  { %v1009_v32 = vpop.permute.xlu1 %1008  ;;  %v820_v61 = vpop.permute.xlu0 %819 }
 0x9ae   :  { %v1014_v30 = vsel %vm254_vm4, %v1009_v32, 0 }
 0x9af   :  { %1337 = vmatpush3.bf16.msra.mxu0 %v1014_v30 }
 0x9b0   :  { %v1409_v15 = vpop.eup %1408 }
 0x9b1   :  { %v954_v56 = vmul.f32 %v1409_v15, %v1405_v6  ;;  %v581_v60 = vpop.permute.xlu1 %580 }
 0x9b2   :  { %584 = vst.msk [vmem:[#allocation3] sm:$0xff] %vm583_vm6, %v581_v60 }
 0x9b3   :  { %v956_v16 = vpack.c.bf16 %v954_v56, %v954_v56  ;;  %823 = vst.msk [vmem:[#allocation3] sm:$0xff] %vm822_vm7, %v820_v61 }
 0x9b4   :  { %v1411_v17 = vpop.eup %1410 }
 0x9b5   :  { %v955_v18 = vmul.f32 %v1411_v17, %v1407_v8  ;;  %1333 = vmatmul.mubr.msk.bf16.vlgmr.msra.gmra.mrb[28].mxu1 %vm226_vm5, %v956_v16 }
 0x9b6   :  { %1350 = vmatprep.mubr.msk.bf16.mxu1 %vm1440_vm1, %v1439_v11  ;;  %1343 = vmatpush3.bf16.msra.mxu1 %v1376_v20 }
 0x9b7   :  { %v957_v19 = vpack.c.bf16 %v955_v18, %v955_v18  ;;  %1344 = vmatprep.subr.bf16.mxu1 %v1439_v11 }
 0x9b9   :  { %1339 = vmatmul.mubr.msk.bf16.vlgmr.msra.gmra.mrb[32].mxu0 %vm226_vm5, %v957_v19 }
 0x9ba   :  { %1345 = vmatpush3.bf16.msra.mxu1 %v1377_v21 }
 0x9bb   :  { %1346 = vmatprep.subr.bf16.mxu1 %v1439_v11 }
 0x9be   :  { %1347 = vmatpush3.bf16.msra.mxu1 %v1378_v23 }
 0x9bf   :  { %1348 = vmatprep.subr.bf16.mxu1 %v1439_v11  ;;  %v1203_v11 = vld [vmem:[%s1700_s4] ss:$0 sm:$0xff] }
 0x9c2   :  { %1349 = vmatpush3.bf16.msra.mxu1 %v1379_v22 }
 0xa88   :  { %v1001_v25 = vpop.f32.mrb[28].mxu1 }
 0xa89   :  { %v1334_v26 = vpop.f32.mrb[29].mxu1 }
 0xa8a   :  { %v1004_v27 = vpop.f32.mrb[30].mxu1 }
 0xa8b   :  { %v1335_v28 = vpop.f32.mrb[31].mxu1 }
 0xa8c   :  { %v1050_v29 = vpop.f32.mrb[32].mxu0 }
 0xa8d   :  { %v1056_v31 = vpack.c.bf16 %v1050_v29, %v1001_v25  ;;  %v1340_v33 = vpop.f32.mrb[33].mxu0 }
 0xa8e   :  { %v1053_v34 = vpop.f32.mrb[34].mxu0 }
 0xa8f   :  { %v1341_v35 = vpop.f32.mrb[35].mxu0  ;;  %1058 = vrot.lane.b32.xlu1 %v1056_v31, %s1442_s1 }
 0xb01   :  { %v1059_v36 = vpop.permute.xlu1 %1058 }
 0xb02   :  { %1062 = vst.msk [vmem:[#allocation3] sm:$0xff] %vm1061_vm8, %v1059_v36 }
 0xb09   :  { %v1063_v37 = vld [vmem:[#allocation3] sm:$0xff] }
 0xb0a   :  { %1351 = vmatmul.mubr.msk.bf16.vlgmr.msra.gmra.mrb[32].mxu1 %vm115_vm2, %v1063_v37 }
 0xbdd   :  { %v1140_v38 = vpop.f32.mrb[32].mxu1 }
 0xbde   :  { %v1141_v24 = vadd.f32 %v1203_v11, %v1140_v38  ;;  %v1352_v39 = vpop.f32.mrb[33].mxu1 }
 0xbdf   :  { %v1143_v40 = vpop.f32.mrb[34].mxu1 }
 0xbe0   :  { %1147 = vst.msk [vmem:[#allocation4] sm:$0xff] %vm65_vm0, %v1141_v24  ;;  %v1144_v41 = vadd.f32 %v1203_v11, %v1143_v40  ;;  %v1353_v42 = vpop.f32.mrb[35].mxu1 }
 0xbe2   :  { %1148 = vst.msk [vmem:[#allocation4 + $0x8] sm:$0xff] %vm65_vm0, %v1144_v41 }
 0xbe3   :  { %1425 = shalt.err (!%p1422_p4)
}
 0xbe4   :  { %s1426_s22 = scalar_lea.hbm %s1701_s5, 256 }
 0xbe5   :  { %p1427_p5 = scmp.ne.s32.totalorder %s1701_s5, %s1426_s22  ;;  %p1430_p6 = scmp.lt.u32.totalorder %s1426_s22, %s1701_s5 }
 0xbe7   :  { %p1432_p7 = pnand %p1430_p6, %p1427_p5 }
 0xbe9   :  { %1435 = shalt.err (!%p1432_p7)
}
 0xbea   :  { %s1449_s27 = smov 128   ;;  %s1450_s28 = smov 8  }
 0xbeb   :  { %1160 = dma.vmem_to_hbm [thread:$0]  %s1155_s19, 256, %s1701_s5, [#allocation5], %s1449_s27, %s1449_s27, %s1450_s28  }
 0xbec   :  { %1436 = dma.done.wait [#allocation5], 256  }
 0xbed   :  { %1437 = vsyncadd [#allocation5], 4294967040 }
 0xbee   :  { %1164 = vsyncpa [#allocation5], 1 }

// kernel: tpu_custom_call.1
= control target key start
LH: loop header
LB: loop body
LE: loop exit
PB: predicated region body
PF: predicated region fallthrough
CT: control target
= control target key end

     0   :  { %v1438_v2 = vmov 0   ;;  %vm65_vm0 = vcmask 261120   ;;  %s1696_s0 = inlined_call_operand.vmem [shape: bf16[16,32], index: 0, kind: input, shape index: {}]   ;;  %s1697_s1 = inlined_call_operand.vmem [shape: bf16[32,192], index: 1, kind: input, shape index: {}]   ;;  %s1698_s2 = inlined_call_operand.vmem [shape: f32[1,192], index: 2, kind: input, shape index: {}]   ;;  %s1699_s3 = inlined_call_operand.vmem [shape: bf16[64,32], index: 3, kind: input, shape index: {}]   ;;  %s1700_s4 = inlined_call_operand.vmem [shape: f32[1,32], index: 4, kind: input, shape index: {}]   ;;  %s1701_s5 = inlined_call_operand.hbm [shape: f32[16,32], index: 5, kind: output, shape index: {}]  }
   0x1   :  { %v1367_v0 = vld [vmem:[%s1697_s1 + $0x4] ss:$8 sps:$4 sm:$0xff]   ;;  %v1369_v1 = vld [vmem:[%s1697_s1] ss:$8 sps:$4 sm:$0xff]   ;;  %101 = vmatprep.mubr.bf16.mxu0 %v1438_v2  ;;  %v1370_v3 = vld [vmem:[%s1697_s1 + $0x14] ss:$8 sps:$4 sm:$0xff]  }
   0x2   :  { %69 = vmatprep.subr.bf16.mxu0 %v1367_v0  ;;  %v1372_v4 = vld [vmem:[%s1697_s1 + $0x10] ss:$8 sps:$4 sm:$0xff]   ;;  %v1373_v5 = vld [vmem:[%s1696_s0] sm:$0xff]  }
   0x3   :  { %70 = vmatpush1.bf16.msra.mxu0 %v1369_v1 }
   0x4   :  { %71 = vmatprep.subr.bf16.mxu0 %v1370_v3 }
   0x7   :  { %72 = vmatpush1.bf16.msra.mxu0 %v1372_v4 }
   0x8   :  { %10 = vsyncpa [#allocation5], 0  ;;  %v30_v6 = vlaneseq  ;;  %v28_v9 = vld [vmem:[%s1698_s2] sm:$0x3]  ;;  %v1439_v11 = vmov 0.0   ;;  %vm1440_vm1 = vmmov 0  }
   0x9   :  { %1246 = vmatprep.subr.bf16.mxu1 %v1439_v11  ;;  %1252 = vmatprep.subr.bf16.mxu0 %v1439_v11  ;;  %vm115_vm2 = vcmask 523264   ;;  %s1441_s0 = smov 64   ;;  %vm131_vm3 = vcmask 130048   ;;  %vm254_vm4 = vcmask 1043456   ;;  %vm226_vm5 = vcmask 64512   ;;  %s1442_s1 = smov 48  }
   0xa   :  { %1170 = vmatmul.mubr.msk.bf16.vlgmr.msra.gmra.mrb[0].mxu0 %vm65_vm0, %v1373_v5  ;;  %v31_v7 = vshrl.u32 %v30_v6, 7  ;;  %1248 = vmatprep.mubr.msk.bf16.mxu1 %vm1440_vm1, %v1439_v11  ;;  %s1443_s2 = smov 112   ;;  %s1444_s30 = smov 32   ;;  %vm583_vm6 = vcmask 261248   ;;  %vm822_vm7 = vcmask 392448   ;;  %vm1061_vm8 = vcmask 523648  }
   0xb   :  { %1254 = vmatprep.mubr.msk.bf16.mxu0 %vm1440_vm1, %v1439_v11  ;;  %s1445_s6 = smov 96   ;;  %s1446_s7 = smov 16  }
   0xc   :  { %v32_v8 = vsub.s32 0, %v31_v7  ;;  %v36_v10 = vsub.s32 1, %v31_v7  ;;  %s1447_s8 = smov 80   ;;  %s1448_s18 = smov [#allocation4]  }
   0xd   :  { %s1154_s19 = sshll.u32 %s1448_s18, 4  ;;  %s1155_s19 = int_to_ptr.vmem [resolvable:$true] %s1154_s19 }
   0xe   :  { %v33_v12 = vrot.slane %v28_v9, %v32_v8  ;;  %v37_v14 = vrot.slane %v28_v9, %v36_v10  ;;  %s1414_s20 = scalar_lea.vmem %s1155_s19, 256  ;;  %p1419_p1 = scmp.lt.s32.totalorder %s1155_s19, %s1155_s19 }
   0xf   :  { %p1415_p0 = scmp.ne.s32.totalorder %s1155_s19, %s1414_s20  ;;  %p1420_p2 = scmp.lt.s32.totalorder %s1414_s20, %s1414_s20 }
  0x11   :  { %p1421_p3 = por %p1420_p2, %p1419_p1 }
  0x13   :  { %p1422_p4 = pnand %p1421_p3, %p1415_p0 }
  0xdd   :  { %v103_v13 = vpop.f32.mrb[0].mxu0 }
  0xde   :  { %v105_v15 = vpop.f32.mrb[1].mxu0  ;;  %v104_v17 = vadd.f32 %v103_v13, %v33_v12 }
  0xdf   :  { %v107_v16 = vpop.f32.mrb[2].mxu0  ;;  %v106_v20 = vadd.f32 %v105_v15, %v37_v14 }
  0xe0   :  { %v108_v18 = vadd.f32 %v107_v16, %v33_v12  ;;  %v109_v19 = vpop.f32.mrb[3].mxu0  ;;  %v1506_v23 = vpack.c.bf16 %v104_v17, %v104_v17 }
  0xe1   :  { %v110_v21 = vadd.f32 %v109_v19, %v37_v14 }
  0xe2   :  { %129 = vrot.lane.b32.xlu0 %v1506_v23, %s1441_s0  ;;  %v1510_v24 = vpack.c.bf16 %v108_v18, %v108_v18 }
  0xe3   :  { %v113_v22 = vpack.c.bf16 %v110_v21, %v106_v20 }
  0xe5   :  { %116 = vst.msk [vmem:[#allocation2 + $0x8] sm:$0xff] %vm115_vm2, %v113_v22 }
  0xe6   :  { %178 = vrot.lane.b32.xlu0 %v1510_v24, %s1441_s0 }
  0xec   :  { %v123_v27 = vld [vmem:[#allocation2 + $0x8] sm:$0xff] }
  0xed   :  { %v1516_v30 = vcombine.low %v123_v27, %v123_v27  ;;  %v1523_v32 = vcombine.high %v123_v27, %v123_v27 }
  0xef   :  { %v256_v31 = vsel %vm254_vm4, %v1516_v30, 0  ;;  %v302_v33 = vsel %vm254_vm4, %v1523_v32, 0 }
 0x154   :  { %v130_v25 = vpop.permute.xlu0 %129 }
 0x155   :  { %v136_v26 = vsel %vm131_vm3, %v130_v25, 0 }
 0x156   :  { %1247 = vmatpush3.bf16.xpose.msra.mxu1 %v136_v26 }
 0x157   :  { %1258 = vmatprep.subr.bf16.mxu1 %v1439_v11 }
 0x158   :  { %v179_v28 = vpop.permute.xlu0 %178 }
 0x159   :  { %v184_v29 = vsel %vm131_vm3, %v179_v28, 0 }
 0x15a   :  { %1253 = vmatpush3.bf16.xpose.msra.mxu0 %v184_v29 }
 0x15b   :  { %1264 = vmatprep.subr.bf16.mxu0 %v1439_v11 }
 0x15d   :  { %1249 = vmatmul.mubr.msk.bf16.vlgmr.msra.gmra.mrb[0].mxu1 %vm131_vm3, %v1506_v23 }
 0x15e   :  { %1259 = vmatpush3.bf16.msra.mxu1 %v256_v31  ;;  %1260 = vmatprep.mubr.msk.bf16.mxu1 %vm1440_vm1, %v1439_v11 }
 0x15f   :  { %1270 = vmatprep.subr.bf16.mxu1 %v1439_v11 }
 0x161   :  { %1255 = vmatmul.mubr.msk.bf16.vlgmr.msra.gmra.mrb[4].mxu0 %vm131_vm3, %v1510_v24 }
 0x162   :  { %1265 = vmatpush3.bf16.msra.mxu0 %v302_v33  ;;  %1266 = vmatprep.mubr.msk.bf16.mxu0 %vm1440_vm1, %v1439_v11 }
 0x163   :  { %1276 = vmatprep.subr.bf16.mxu0 %v1439_v11 }
 0x230   :  { %v172_v34 = vpop.f32.mrb[0].mxu1 }
 0x231   :  { %v1250_v35 = vpop.f32.mrb[1].mxu1  ;;  %v227_v36 = vsel %vm226_vm5, %v172_v34, -inf }
 0x232   :  { %228 = vmax.xlane.f32.xlu1 %v227_v36  ;;  %v175_v37 = vpop.f32.mrb[2].mxu1 }
 0x233   :  { %v1251_v38 = vpop.f32.mrb[3].mxu1 }
 0x234   :  { %v220_v39 = vpop.f32.mrb[4].mxu0 }
 0x235   :  { %v1256_v40 = vpop.f32.mrb[5].mxu0  ;;  %v230_v41 = vsel %vm226_vm5, %v220_v39, -inf }
 0x236   :  { %231 = vmax.xlane.f32.xlu1 %v230_v41  ;;  %v223_v42 = vpop.f32.mrb[6].mxu0 }
 0x237   :  { %v1257_v43 = vpop.f32.mrb[7].mxu0 }
 0x247   :  { %357 = vrot.lane.b32.xlu1 %v1506_v23, %s1442_s1 }
 0x24b   :  { %408 = vrot.lane.b32.xlu1 %v1510_v24, %s1442_s1 }
 0x2bf   :  { %v229_v44 = vpop.xlane.xlu1 %228 }
 0x2c0   :  { %v233_v45 = vsub.f32 %v172_v34, %v229_v44 }
 0x2c2   :  { %v235_v46 = vmul.f32 1.442695, %v233_v45 }
 0x2c3   :  { %v232_v47 = vpop.xlane.xlu1 %231 }
 0x2c4   :  { %1380 = vpow2.f32 %v235_v46  ;;  %v234_v48 = vsub.f32 %v220_v39, %v232_v47 }
 0x2c6   :  { %v237_v49 = vmul.f32 1.442695, %v234_v48 }
 0x2c7   :  { %v358_v54 = vpop.permute.xlu1 %357 }
 0x2c8   :  { %1382 = vpow2.f32 %v237_v49  ;;  %v363_v62 = vsel %vm131_vm3, %v358_v54, 0 }
 0x2cb   :  { %v409_v55 = vpop.permute.xlu1 %408 }
 0x2cc   :  { %v414_v1 = vsel %vm131_vm3, %v409_v55, 0 }
 0x2ce   :  { %v1381_v50 = vpop.eup %1380 }
 0x2cf   :  { %v239_v51 = vsel %vm226_vm5, %v1381_v50, 0.0 }
 0x2d0   :  { %240 = vadd.xlane.f32.xlu0 %v239_v51 }
 0x2d2   :  { %v1383_v52 = vpop.eup %1382 }
 0x2d3   :  { %v242_v53 = vsel %vm226_vm5, %v1383_v52, 0.0 }
 0x2d4   :  { %243 = vadd.xlane.f32.xlu1 %v242_v53 }
 0x2e5   :  { %355 = vrot.lane.b32.xlu1 %v1506_v23, %s1443_s2 }
 0x2e9   :  { %406 = vrot.lane.b32.xlu1 %v1510_v24, %s1443_s2 }
 0x35d   :  { %v241_v56 = vpop.xlane.xlu0 %240 }
 0x35e   :  { %1384 = vrcp.f32 %v241_v56 }
 0x361   :  { %v244_v57 = vpop.xlane.xlu1 %243 }
 0x362   :  { %1386 = vrcp.f32 %v244_v57 }
 0x365   :  { %v356_v2 = vpop.permute.xlu1 %355 }
 0x368   :  { %v1385_v58 = vpop.eup %1384 }
 0x369   :  { %v247_v59 = vmul.f32 %v1385_v58, %v1381_v50  ;;  %v407_v3 = vpop.permute.xlu1 %406 }
 0x36b   :  { %v249_v60 = vpack.c.bf16 %v247_v59, %v247_v59 }
 0x36c   :  { %v1387_v61 = vpop.eup %1386 }
 0x36d   :  { %v248_v63 = vmul.f32 %v1387_v61, %v1383_v52  ;;  %1261 = vmatmul.mubr.msk.bf16.vlgmr.msra.gmra.mrb[4].mxu1 %vm226_vm5, %v249_v60 }
 0x36e   :  { %1271 = vmatpush3.bf16.xpose.msra.mxu1 %v363_v62  ;;  %1272 = vmatprep.mubr.msk.bf16.mxu1 %vm1440_vm1, %v1439_v11 }
 0x36f   :  { %v250_v0 = vpack.c.bf16 %v248_v63, %v248_v63  ;;  %1282 = vmatprep.subr.bf16.mxu1 %v1439_v11 }
 0x371   :  { %1267 = vmatmul.mubr.msk.bf16.vlgmr.msra.gmra.mrb[8].mxu0 %vm226_vm5, %v250_v0 }
 0x372   :  { %1277 = vmatpush3.bf16.xpose.msra.mxu0 %v414_v1  ;;  %1278 = vmatprep.mubr.msk.bf16.mxu0 %vm1440_vm1, %v1439_v11 }
 0x373   :  { %1288 = vmatprep.subr.bf16.mxu0 %v1439_v11 }
 0x375   :  { %1273 = vmatmul.mubr.msk.bf16.vlgmr.msra.gmra.mrb[8].mxu1 %vm131_vm3, %v356_v2 }
 0x376   :  { %1284 = vmatprep.mubr.msk.bf16.mxu1 %vm1440_vm1, %v1439_v11 }
 0x379   :  { %1279 = vmatmul.mubr.msk.bf16.vlgmr.msra.gmra.mrb[12].mxu0 %vm131_vm3, %v407_v3 }
 0x37a   :  { %1290 = vmatprep.mubr.msk.bf16.mxu0 %vm1440_vm1, %v1439_v11 }
 0x440   :  { %v292_v4 = vpop.f32.mrb[4].mxu1 }
 0x441   :  { %v1262_v5 = vpop.f32.mrb[5].mxu1 }
 0x442   :  { %v295_v6 = vpop.f32.mrb[6].mxu1 }
 0x443   :  { %v1263_v7 = vpop.f32.mrb[7].mxu1 }
 0x444   :  { %v338_v8 = vpop.f32.mrb[8].mxu0 }
 0x445   :  { %v344_v9 = vpack.c.bf16 %v338_v8, %v292_v4  ;;  %v1268_v10 = vpop.f32.mrb[9].mxu0 }
 0x446   :  { %v341_v12 = vpop.f32.mrb[10].mxu0 }
 0x447   :  { %345 = vst.msk [vmem:[#allocation3] sm:$0xff] %vm131_vm3, %v344_v9  ;;  %v1269_v13 = vpop.f32.mrb[11].mxu0 }
 0x448   :  { %v399_v14 = vpop.f32.mrb[8].mxu1 }
 0x449   :  { %v1274_v15 = vpop.f32.mrb[9].mxu1  ;;  %v456_v16 = vsel %vm226_vm5, %v399_v14, -inf }
 0x44a   :  { %457 = vmax.xlane.f32.xlu0 %v456_v16  ;;  %v402_v17 = vpop.f32.mrb[10].mxu1 }
 0x44b   :  { %v1275_v18 = vpop.f32.mrb[11].mxu1 }
 0x44c   :  { %v450_v19 = vpop.f32.mrb[12].mxu0 }
 0x44d   :  { %v1280_v20 = vpop.f32.mrb[13].mxu0  ;;  %v459_v21 = vsel %vm226_vm5, %v450_v19, -inf }
 0x44e   :  { %460 = vmax.xlane.f32.xlu1 %v459_v21  ;;  %v453_v22 = vpop.f32.mrb[14].mxu0 }
 0x44f   :  { %v1281_v25 = vpop.f32.mrb[15].mxu0 }
 0x45f   :  { %647 = vrot.lane.b32.xlu1 %v1510_v24, %s1444_s30 }
 0x460   :  { %481 = vrot.lane.b32.xlu0 %v1516_v30, %s1443_s2 }
 0x464   :  { %530 = vrot.lane.b32.xlu0 %v1523_v32, %s1443_s2 }
 0x4d7   :  { %v458_v26 = vpop.xlane.xlu0 %457 }
 0x4d8   :  { %v462_v27 = vsub.f32 %v399_v14, %v458_v26 }
 0x4da   :  { %v464_v28 = vmul.f32 1.442695, %v462_v27 }
 0x4db   :  { %v461_v29 = vpop.xlane.xlu1 %460  ;;  %v482_v31 = vpop.permute.xlu0 %481 }
 0x4dc   :  { %1388 = vpow2.f32 %v464_v28  ;;  %v463_v33 = vsub.f32 %v450_v19, %v461_v29  ;;  %v487_v34 = vsel %vm254_vm4, %v482_v31, 0 }
 0x4dd   :  { %1283 = vmatpush3.bf16.msra.mxu1 %v487_v34 }
 0x4de   :  { %v466_v35 = vmul.f32 1.442695, %v463_v33  ;;  %1294 = vmatprep.subr.bf16.mxu1 %v1439_v11 }
 0x4df   :  { %v531_v36 = vpop.permute.xlu0 %530  ;;  %v648_v51 = vpop.permute.xlu1 %647 }
 0x4e0   :  { %1390 = vpow2.f32 %v466_v35  ;;  %v536_v37 = vsel %vm254_vm4, %v531_v36, 0  ;;  %v653_v53 = vsel %vm131_vm3, %v648_v51, 0 }
 0x4e1   :  { %1289 = vmatpush3.bf16.msra.mxu0 %v536_v37 }
 0x4e2   :  { %1300 = vmatprep.subr.bf16.mxu0 %v1439_v11 }
 0x4e6   :  { %v1389_v38 = vpop.eup %1388 }
 0x4e7   :  { %v468_v39 = vsel %vm226_vm5, %v1389_v38, 0.0 }
 0x4e8   :  { %469 = vadd.xlane.f32.xlu0 %v468_v39 }
 0x4ea   :  { %v1391_v40 = vpop.eup %1390 }
 0x4eb   :  { %v471_v41 = vsel %vm226_vm5, %v1391_v40, 0.0 }
 0x4ec   :  { %472 = vadd.xlane.f32.xlu0 %v471_v41 }
 0x502   :  { %596 = vrot.lane.b32.xlu0 %v1506_v23, %s1444_s30 }
 0x506   :  { %594 = vrot.lane.b32.xlu0 %v1506_v23, %s1445_s6 }
 0x50a   :  { %645 = vrot.lane.b32.xlu0 %v1510_v24, %s1445_s6 }
 0x575   :  { %v470_v42 = vpop.xlane.xlu0 %469 }
 0x576   :  { %1392 = vrcp.f32 %v470_v42 }
 0x579   :  { %v473_v43 = vpop.xlane.xlu0 %472 }
 0x57a   :  { %1394 = vrcp.f32 %v473_v43 }
 0x57d   :  { %v597_v46 = vpop.permute.xlu0 %596 }
 0x57e   :  { %v602_v50 = vsel %vm131_vm3, %v597_v46, 0 }
 0x580   :  { %v1393_v44 = vpop.eup %1392 }
 0x581   :  { %v476_v45 = vmul.f32 %v1393_v44, %v1389_v38  ;;  %v595_v54 = vpop.permute.xlu0 %594 }
 0x583   :  { %v478_v47 = vpack.c.bf16 %v476_v45, %v476_v45 }
 0x584   :  { %v1395_v48 = vpop.eup %1394 }
 0x585   :  { %v477_v49 = vmul.f32 %v1395_v48, %v1391_v40  ;;  %1285 = vmatmul.mubr.msk.bf16.vlgmr.msra.gmra.mrb[12].mxu1 %vm226_vm5, %v478_v47  ;;  %v646_v55 = vpop.permute.xlu0 %645 }
 0x586   :  { %1295 = vmatpush3.bf16.xpose.msra.mxu1 %v602_v50  ;;  %1296 = vmatprep.mubr.msk.bf16.mxu1 %vm1440_vm1, %v1439_v11 }
 0x587   :  { %v479_v52 = vpack.c.bf16 %v477_v49, %v477_v49  ;;  %1306 = vmatprep.subr.bf16.mxu1 %v1439_v11 }
 0x589   :  { %1291 = vmatmul.mubr.msk.bf16.vlgmr.msra.gmra.mrb[16].mxu0 %vm226_vm5, %v479_v52 }
 0x58a   :  { %1301 = vmatpush3.bf16.xpose.msra.mxu0 %v653_v53  ;;  %1302 = vmatprep.mubr.msk.bf16.mxu0 %vm1440_vm1, %v1439_v11 }
 0x58b   :  { %1312 = vmatprep.subr.bf16.mxu0 %v1439_v11 }
 0x58d   :  { %1297 = vmatmul.mubr.msk.bf16.vlgmr.msra.gmra.mrb[16].mxu1 %vm131_vm3, %v595_v54 }
 0x58e   :  { %1308 = vmatprep.mubr.msk.bf16.mxu1 %vm1440_vm1, %v1439_v11 }
 0x591   :  { %1303 = vmatmul.mubr.msk.bf16.vlgmr.msra.gmra.mrb[20].mxu0 %vm131_vm3, %v646_v55 }
 0x592   :  { %1314 = vmatprep.mubr.msk.bf16.mxu0 %vm1440_vm1, %v1439_v11 }
 0x658   :  { %v1600_v56 = vpop.f32.mrb[12].mxu1 }
 0x659   :  { %v1286_v57 = vpop.f32.mrb[13].mxu1 }
 0x65a   :  { %v526_v58 = vpop.f32.mrb[14].mxu1 }
 0x65b   :  { %v1287_v59 = vpop.f32.mrb[15].mxu1 }
 0x65c   :  { %v1602_v60 = vpop.f32.mrb[16].mxu0 }
 0x65d   :  { %v578_v61 = vpack.c.bf16 %v1602_v60, %v1600_v56  ;;  %v1292_v62 = vpop.f32.mrb[17].mxu0 }
 0x65e   :  { %v575_v63 = vpop.f32.mrb[18].mxu0 }
 0x65f   :  { %v1293_v0 = vpop.f32.mrb[19].mxu0 }
 0x660   :  { %v638_v1 = vpop.f32.mrb[16].mxu1 }
 0x661   :  { %v1298_v2 = vpop.f32.mrb[17].mxu1  ;;  %v695_v3 = vsel %vm226_vm5, %v638_v1, -inf }
 0x662   :  { %696 = vmax.xlane.f32.xlu0 %v695_v3  ;;  %v641_v4 = vpop.f32.mrb[18].mxu1 }
 0x663   :  { %v1299_v5 = vpop.f32.mrb[19].mxu1 }
 0x664   :  { %v689_v6 = vpop.f32.mrb[20].mxu0 }
 0x665   :  { %v1304_v7 = vpop.f32.mrb[21].mxu0  ;;  %v698_v8 = vsel %vm226_vm5, %v689_v6, -inf }
 0x666   :  { %699 = vmax.xlane.f32.xlu1 %v698_v8  ;;  %v692_v9 = vpop.f32.mrb[22].mxu0 }
 0x667   :  { %v1305_v10 = vpop.f32.mrb[23].mxu0 }
 0x677   :  { %769 = vrot.lane.b32.xlu1 %v1523_v32, %s1445_s6 }
 0x678   :  { %720 = vrot.lane.b32.xlu0 %v1516_v30, %s1445_s6 }
 0x67b   :  { %835 = vrot.lane.b32.xlu1 %v1506_v23, %s1446_s7 }
 0x67f   :  { %833 = vrot.lane.b32.xlu1 %v1506_v23, %s1447_s8 }
 0x6ef   :  { %v697_v12 = vpop.xlane.xlu0 %696 }
 0x6f0   :  { %v701_v13 = vsub.f32 %v638_v1, %v697_v12 }
 0x6f2   :  { %v703_v14 = vmul.f32 1.442695, %v701_v13 }
 0x6f3   :  { %v700_v15 = vpop.xlane.xlu1 %699  ;;  %v721_v16 = vpop.permute.xlu0 %720 }
 0x6f4   :  { %1396 = vpow2.f32 %v703_v14  ;;  %v702_v17 = vsub.f32 %v689_v6, %v700_v15  ;;  %v726_v18 = vsel %vm254_vm4, %v721_v16, 0 }
 0x6f5   :  { %1307 = vmatpush3.bf16.msra.mxu1 %v726_v18 }
 0x6f6   :  { %v705_v19 = vmul.f32 1.442695, %v702_v17  ;;  %1318 = vmatprep.subr.bf16.mxu1 %v1439_v11 }
 0x6f7   :  { %v770_v20 = vpop.permute.xlu1 %769 }
 0x6f8   :  { %1398 = vpow2.f32 %v705_v19  ;;  %v775_v21 = vsel %vm254_vm4, %v770_v20, 0  ;;  %v1376_v20 = vld [vmem:[%s1699_s3] sm:$0xff]  }
 0x6f9   :  { %1313 = vmatpush3.bf16.msra.mxu0 %v775_v21  ;;  %v1377_v21 = vld [vmem:[%s1699_s3 + $0x8] sm:$0xff]  }
 0x6fa   :  { %1324 = vmatprep.subr.bf16.mxu0 %v1439_v11 }
 0x6fb   :  { %v836_v33 = vpop.permute.xlu1 %835 }
 0x6fc   :  { %v841_v36 = vsel %vm131_vm3, %v836_v33, 0 }
 0x6fe   :  { %v1397_v23 = vpop.eup %1396 }
 0x6ff   :  { %v707_v22 = vsel %vm226_vm5, %v1397_v23, 0.0  ;;  %v834_v40 = vpop.permute.xlu1 %833 }
 0x700   :  { %708 = vadd.xlane.f32.xlu0 %v707_v22  ;;  %v1379_v22 = vld [vmem:[%s1699_s3 + $0x18] sm:$0xff]  }
 0x702   :  { %v1399_v25 = vpop.eup %1398 }
 0x703   :  { %v710_v26 = vsel %vm226_vm5, %v1399_v25, 0.0 }
 0x704   :  { %711 = vadd.xlane.f32.xlu0 %v710_v26 }
 0x71a   :  { %886 = vrot.lane.b32.xlu0 %v1510_v24, %s1446_s7 }
 0x71e   :  { %884 = vrot.lane.b32.xlu0 %v1510_v24, %s1447_s8 }
 0x78d   :  { %v709_v27 = vpop.xlane.xlu0 %708 }
 0x78e   :  { %1400 = vrcp.f32 %v709_v27 }
 0x791   :  { %v712_v28 = vpop.xlane.xlu0 %711 }
 0x792   :  { %1402 = vrcp.f32 %v712_v28 }
 0x795   :  { %v887_v38 = vpop.permute.xlu0 %886 }
 0x796   :  { %v892_v39 = vsel %vm131_vm3, %v887_v38, 0 }
 0x798   :  { %v1401_v29 = vpop.eup %1400 }
 0x799   :  { %v715_v31 = vmul.f32 %v1401_v29, %v1397_v23  ;;  %v885_v41 = vpop.permute.xlu0 %884  ;;  %v1378_v23 = vld [vmem:[%s1699_s3 + $0x10] sm:$0xff]  }
 0x79b   :  { %v717_v34 = vpack.c.bf16 %v715_v31, %v715_v31 }
 0x79c   :  { %v1403_v35 = vpop.eup %1402 }
 0x79d   :  { %v716_v37 = vmul.f32 %v1403_v35, %v1399_v25  ;;  %1309 = vmatmul.mubr.msk.bf16.vlgmr.msra.gmra.mrb[20].mxu1 %vm226_vm5, %v717_v34 }
 0x79e   :  { %1319 = vmatpush3.bf16.xpose.msra.mxu1 %v841_v36  ;;  %1320 = vmatprep.mubr.msk.bf16.mxu1 %vm1440_vm1, %v1439_v11 }
 0x79f   :  { %v718_v24 = vpack.c.bf16 %v716_v37, %v716_v37  ;;  %1330 = vmatprep.subr.bf16.mxu1 %v1439_v11 }
 0x7a1   :  { %1315 = vmatmul.mubr.msk.bf16.vlgmr.msra.gmra.mrb[24].mxu0 %vm226_vm5, %v718_v24 }
 0x7a2   :  { %1325 = vmatpush3.bf16.xpose.msra.mxu0 %v892_v39  ;;  %1326 = vmatprep.mubr.msk.bf16.mxu0 %vm1440_vm1, %v1439_v11 }
 0x7a3   :  { %1336 = vmatprep.subr.bf16.mxu0 %v1439_v11 }
 0x7a5   :  { %1321 = vmatmul.mubr.msk.bf16.vlgmr.msra.gmra.mrb[24].mxu1 %vm131_vm3, %v834_v40 }
 0x7a6   :  { %1332 = vmatprep.mubr.msk.bf16.mxu1 %vm1440_vm1, %v1439_v11 }
 0x7a9   :  { %1327 = vmatmul.mubr.msk.bf16.vlgmr.msra.gmra.mrb[28].mxu0 %vm131_vm3, %v885_v41 }
 0x7aa   :  { %1338 = vmatprep.mubr.msk.bf16.mxu0 %vm1440_vm1, %v1439_v11 }
 0x870   :  { %v762_v42 = vpop.f32.mrb[20].mxu1 }
 0x871   :  { %v1310_v43 = vpop.f32.mrb[21].mxu1 }
 0x872   :  { %v765_v44 = vpop.f32.mrb[22].mxu1 }
 0x873   :  { %v1311_v45 = vpop.f32.mrb[23].mxu1 }
 0x874   :  { %v811_v46 = vpop.f32.mrb[24].mxu0 }
 0x875   :  { %v817_v47 = vpack.c.bf16 %v811_v46, %v762_v42  ;;  %v1316_v48 = vpop.f32.mrb[25].mxu0 }
 0x876   :  { %v814_v49 = vpop.f32.mrb[26].mxu0 }
 0x877   :  { %v1317_v50 = vpop.f32.mrb[27].mxu0 }
 0x878   :  { %v877_v51 = vpop.f32.mrb[24].mxu1 }
 0x879   :  { %v1322_v52 = vpop.f32.mrb[25].mxu1  ;;  %v934_v53 = vsel %vm226_vm5, %v877_v51, -inf }
 0x87a   :  { %935 = vmax.xlane.f32.xlu1 %v934_v53  ;;  %v880_v54 = vpop.f32.mrb[26].mxu1 }
 0x87b   :  { %v1323_v55 = vpop.f32.mrb[27].mxu1 }
 0x87c   :  { %v928_v57 = vpop.f32.mrb[28].mxu0 }
 0x87d   :  { %v1328_v58 = vpop.f32.mrb[29].mxu0  ;;  %v937_v59 = vsel %vm226_vm5, %v928_v57, -inf }
 0x87e   :  { %938 = vmax.xlane.f32.xlu0 %v937_v59  ;;  %v931_v62 = vpop.f32.mrb[30].mxu0 }
 0x87f   :  { %v1329_v63 = vpop.f32.mrb[31].mxu0 }
 0x907   :  { %v936_v0 = vpop.xlane.xlu1 %935 }
 0x908   :  { %v940_v1 = vsub.f32 %v877_v51, %v936_v0 }
 0x90a   :  { %v942_v2 = vmul.f32 1.442695, %v940_v1 }
 0x90b   :  { %v939_v3 = vpop.xlane.xlu0 %938 }
 0x90c   :  { %1404 = vpow2.f32 %v942_v2  ;;  %v941_v4 = vsub.f32 %v928_v57, %v939_v3 }
 0x90e   :  { %v944_v5 = vmul.f32 1.442695, %v941_v4 }
 0x910   :  { %1406 = vpow2.f32 %v944_v5 }
 0x916   :  { %v1405_v6 = vpop.eup %1404 }
 0x917   :  { %v946_v7 = vsel %vm226_vm5, %v1405_v6, 0.0 }
 0x918   :  { %947 = vadd.xlane.f32.xlu0 %v946_v7 }
 0x91a   :  { %v1407_v8 = vpop.eup %1406 }
 0x91b   :  { %v949_v9 = vsel %vm226_vm5, %v1407_v8, 0.0 }
 0x91c   :  { %950 = vadd.xlane.f32.xlu1 %v949_v9 }
 0x92d   :  { %1008 = vrot.lane.b32.xlu1 %v1523_v32, %s1447_s8 }
 0x92e   :  { %959 = vrot.lane.b32.xlu0 %v1516_v30, %s1447_s8 }
 0x931   :  { %580 = vrot.lane.b32.xlu1 %v578_v61, %s1446_s7 }
 0x932   :  { %819 = vrot.lane.b32.xlu0 %v817_v47, %s1444_s30 }
 0x9a5   :  { %v948_v10 = vpop.xlane.xlu0 %947 }
 0x9a6   :  { %1408 = vrcp.f32 %v948_v10 }
 0x9a9   :  { %v960_v12 = vpop.permute.xlu0 %959  ;;  %v951_v13 = vpop.xlane.xlu1 %950 }
 0x9aa   :  { %v965_v14 = vsel %vm254_vm4, %v960_v12, 0  ;;  %1410 = vrcp.f32 %v951_v13 }
 0x9ab   :  { %1331 = vmatpush3.bf16.msra.mxu1 %v965_v14 }
 0x9ac   :  { %1342 = vmatprep.subr.bf16.mxu1 %v1439_v11 }
 0x9ad   :  { %v1009_v32 = vpop.permute.xlu1 %1008  ;;  %v820_v61 = vpop.permute.xlu0 %819 }
 0x9ae   :  { %v1014_v30 = vsel %vm254_vm4, %v1009_v32, 0 }
 0x9af   :  { %1337 = vmatpush3.bf16.msra.mxu0 %v1014_v30 }
 0x9b0   :  { %v1409_v15 = vpop.eup %1408 }
 0x9b1   :  { %v954_v56 = vmul.f32 %v1409_v15, %v1405_v6  ;;  %v581_v60 = vpop.permute.xlu1 %580 }
 0x9b2   :  { %584 = vst.msk [vmem:[#allocation3] sm:$0xff] %vm583_vm6, %v581_v60 }
 0x9b3   :  { %v956_v16 = vpack.c.bf16 %v954_v56, %v954_v56  ;;  %823 = vst.msk [vmem:[#allocation3] sm:$0xff] %vm822_vm7, %v820_v61 }
 0x9b4   :  { %v1411_v17 = vpop.eup %1410 }
 0x9b5   :  { %v955_v18 = vmul.f32 %v1411_v17, %v1407_v8  ;;  %1333 = vmatmul.mubr.msk.bf16.vlgmr.msra.gmra.mrb[28].mxu1 %vm226_vm5, %v956_v16 }
 0x9b6   :  { %1350 = vmatprep.mubr.msk.bf16.mxu1 %vm1440_vm1, %v1439_v11  ;;  %1343 = vmatpush3.bf16.msra.mxu1 %v1376_v20 }
 0x9b7   :  { %v957_v19 = vpack.c.bf16 %v955_v18, %v955_v18  ;;  %1344 = vmatprep.subr.bf16.mxu1 %v1439_v11 }
 0x9b9   :  { %1339 = vmatmul.mubr.msk.bf16.vlgmr.msra.gmra.mrb[32].mxu0 %vm226_vm5, %v957_v19 }
 0x9ba   :  { %1345 = vmatpush3.bf16.msra.mxu1 %v1377_v21 }
 0x9bb   :  { %1346 = vmatprep.subr.bf16.mxu1 %v1439_v11 }
 0x9be   :  { %1347 = vmatpush3.bf16.msra.mxu1 %v1378_v23 }
 0x9bf   :  { %1348 = vmatprep.subr.bf16.mxu1 %v1439_v11  ;;  %v1203_v11 = vld [vmem:[%s1700_s4] ss:$0 sm:$0xff] }
 0x9c2   :  { %1349 = vmatpush3.bf16.msra.mxu1 %v1379_v22 }
 0xa88   :  { %v1001_v25 = vpop.f32.mrb[28].mxu1 }
 0xa89   :  { %v1334_v26 = vpop.f32.mrb[29].mxu1 }
 0xa8a   :  { %v1004_v27 = vpop.f32.mrb[30].mxu1 }
 0xa8b   :  { %v1335_v28 = vpop.f32.mrb[31].mxu1 }
 0xa8c   :  { %v1050_v29 = vpop.f32.mrb[32].mxu0 }
 0xa8d   :  { %v1056_v31 = vpack.c.bf16 %v1050_v29, %v1001_v25  ;;  %v1340_v33 = vpop.f32.mrb[33].mxu0 }
 0xa8e   :  { %v1053_v34 = vpop.f32.mrb[34].mxu0 }
 0xa8f   :  { %v1341_v35 = vpop.f32.mrb[35].mxu0  ;;  %1058 = vrot.lane.b32.xlu1 %v1056_v31, %s1442_s1 }
 0xb01   :  { %v1059_v36 = vpop.permute.xlu1 %1058 }
 0xb02   :  { %1062 = vst.msk [vmem:[#allocation3] sm:$0xff] %vm1061_vm8, %v1059_v36 }
 0xb09   :  { %v1063_v37 = vld [vmem:[#allocation3] sm:$0xff] }
 0xb0a   :  { %1351 = vmatmul.mubr.msk.bf16.vlgmr.msra.gmra.mrb[32].mxu1 %vm115_vm2, %v1063_v37 }
 0xbdd   :  { %v1140_v38 = vpop.f32.mrb[32].mxu1 }
 0xbde   :  { %v1141_v24 = vadd.f32 %v1203_v11, %v1140_v38  ;;  %v1352_v39 = vpop.f32.mrb[33].mxu1 }
 0xbdf   :  { %v1143_v40 = vpop.f32.mrb[34].mxu1 }
 0xbe0   :  { %1147 = vst.msk [vmem:[#allocation4] sm:$0xff] %vm65_vm0, %v1141_v24  ;;  %v1144_v41 = vadd.f32 %v1203_v11, %v1143_v40  ;;  %v1353_v42 = vpop.f32.mrb[35].mxu1 }
 0xbe2   :  { %1148 = vst.msk [vmem:[#allocation4 + $0x8] sm:$0xff] %vm65_vm0, %v1144_v41 }
 0xbe3   :  { %1425 = shalt.err (!%p1422_p4)
}
 0xbe4   :  { %s1426_s22 = scalar_lea.hbm %s1701_s5, 256 }
 0xbe5   :  { %p1427_p5 = scmp.ne.s32.totalorder %s1701_s5, %s1426_s22  ;;  %p1430_p6 = scmp.lt.u32.totalorder %s1426_s22, %s1701_s5 }
 0xbe7   :  { %p1432_p7 = pnand %p1430_p6, %p1427_p5 }
 0xbe9   :  { %1435 = shalt.err (!%p1432_p7)
}
 0xbea   :  { %s1449_s27 = smov 128   ;;  %s1450_s28 = smov 8  }
 0xbeb   :  { %1160 = dma.vmem_to_hbm [thread:$0]  %s1155_s19, 256, %s1701_s5, [#allocation5], %s1449_s27, %s1449_s27, %s1450_s28  }
 0xbec   :  { %1436 = dma.done.wait [#allocation5], 256  }
 0xbed   :  { %1437 = vsyncadd [#allocation5], 4294967040 }
 0xbee   :  { %1164 = vsyncpa [#allocation5], 1 }

</bundles_post_ra>
